<compile_context>
chip_gen: v7x
topology: tpu7x:2x2x1
jax: 0.10.0
libtpu: 0.0.40
codegen_flags: <defaults>
</compile_context>

<pallas_src>
import math
from functools import partial

import jax
import jax.numpy as jnp
import numpy as np
from jax.experimental import pallas as pl
from jax.experimental.pallas import tpu as pltpu  # noqa: F401  (TPU backend availability)


# ----------------------------------------------------------------------------- helpers (reference)
def _layernorm(x, g, b, eps=1e-5):
    mu = jnp.mean(x, axis=-1, keepdims=True)
    var = jnp.mean((x - mu) ** 2, axis=-1, keepdims=True)
    return (x - mu) * jax.lax.rsqrt(var + eps) * g + b


def _gelu_exact(x):
    # matches torch.nn.GELU() (erf form)
    return 0.5 * x * (1.0 + jax.lax.erf(x * (1.0 / math.sqrt(2.0))))


# ----------------------------------------------------------------------------- fused forward kernel
def fused_transformer_kernel(
    x_ref, beh_ref,
    wbm1_ref, bbm1_ref, wbm2_ref, bbm2_ref,            # BehaviorMLP (stacked over depth)
    ln1g_ref, ln1b_ref, wqkv_ref, wao_ref, bao_ref,    # attention (original weight layouts)
    ln2g_ref, ln2b_ref, wff1_ref, bff1_ref, wff2_ref, bff2_ref,  # FFN
    o_ref, *, num_heads, head_dim,
):
    B, N, D = x_ref.shape
    H, hd = num_heads, head_dim
    inner = H * hd
    depth = wqkv_ref.shape[0]
    BN = B * N
    inv_d = 1.0 / D
    scale = 1.0 / math.sqrt(hd)            # F.scaled_dot_product_attention default
    inv_sqrt2 = 1.0 / math.sqrt(2.0)

    def layernorm(t, g, b):
        mu = jnp.sum(t, axis=-1, keepdims=True) * inv_d
        c = t - mu
        var = jnp.sum(c * c, axis=-1, keepdims=True) * inv_d
        return c * jax.lax.rsqrt(var + 1e-5) * g + b

    # ---- BehaviorMLP (behavior_mode=3) hoisted out of the layer loop ----
    # states[l] depends only on `behaviors` + layer-l weights, so compute all layers
    # up front, batched over depth: Linear -> Tanh -> [Dropout p=0] -> Linear -> Tanh.
    beh = beh_ref[...]                                            # (B, bmlp_in)
    beh_l = jnp.broadcast_to(beh[None], (depth,) + beh.shape)     # (L, B, bmlp_in) (tiny)
    s1 = jnp.tanh(
        jnp.einsum("lbi,lio->lbo", beh_l, wbm1_ref[...],
                   preferred_element_type=jnp.float32) + bbm1_ref[...])
    st_all = jnp.tanh(
        jnp.einsum("lbi,lio->lbo", s1, wbm2_ref[...],
                   preferred_element_type=jnp.float32) + bbm2_ref[...])   # (L, B, D)

    xf = x_ref[...].reshape(BN, D)          # flattened activations, resident for all layers

    for l in range(depth):                  # static unrolled layer loop (depth is tiny)
        # outputs = inputs + states (BehaviorMLP injection)
        y = (xf.reshape(B, N, D) + st_all[l][:, None, :]).reshape(BN, D)

        # ---- multi-head self-attention (pre-LN) ----
        yn = layernorm(y, ln1g_ref[l], ln1b_ref[l])               # (BN, D)
        # single wide QKV matmul: (BN, D) x (D, 3*inner) -> (BN, 3*inner)
        qkv = jnp.dot(yn, wqkv_ref[l], preferred_element_type=jnp.float32)

        # per-head q/k/v via lane slices (columns: q=[0,inner), k=[inner,2*inner), v=[2*inner,3*inner),
        # head h occupies lanes h*hd:(h+1)*hd inside each chunk — matches reference split/reshape).
        head_outs = []
        for h in range(H):
            qh = qkv[:, h * hd:(h + 1) * hd].reshape(B, N, hd)
            kh = qkv[:, inner + h * hd:inner + (h + 1) * hd].reshape(B, N, hd)
            vh = qkv[:, 2 * inner + h * hd:2 * inner + (h + 1) * hd].reshape(B, N, hd)
            s = jnp.einsum("bnd,bmd->bnm", qh, kh,
                           preferred_element_type=jnp.float32) * scale
            s = s - jnp.max(s, axis=-1, keepdims=True)
            p = jnp.exp(s)
            p = p * pl.reciprocal(jnp.sum(p, axis=-1, keepdims=True), approx=False)
            head_outs.append(jnp.einsum("bnm,bmd->bnd", p, vh,
                                        preferred_element_type=jnp.float32))  # (B, N, hd)
        # heads back into lanes: (B, N, inner) -> (BN, inner), then ONE output projection
        o = jnp.concatenate(head_outs, axis=-1).reshape(BN, inner)
        attn = jnp.dot(o, wao_ref[l], preferred_element_type=jnp.float32) + bao_ref[l]
        y2 = y + attn                                             # residual 1

        # ---- feed-forward (pre-LN, exact GELU) ----
        z = layernorm(y2, ln2g_ref[l], ln2b_ref[l])
        h1 = jnp.dot(z, wff1_ref[l], preferred_element_type=jnp.float32) + bff1_ref[l]
        h1 = 0.5 * h1 * (1.0 + jax.lax.erf(h1 * inv_sqrt2))
        h2 = jnp.dot(h1, wff2_ref[l], preferred_element_type=jnp.float32) + bff2_ref[l]
        xf = y2 + h2                                              # residual 2

    o_ref[...] = xf.reshape(B, N, D).astype(o_ref.dtype)


# ----------------------------------------------------------------------------- wrapper
@partial(jax.jit, static_argnames=("num_heads", "head_dim"))
def transformer_forward(x, behaviors, pupil_centers, params, num_heads, head_dim):
    # behavior_mode=3: only `behaviors` feeds the per-block BehaviorMLP; pupil_centers unused.
    del pupil_centers
    B, N, D = x.shape
    kern = partial(fused_transformer_kernel, num_heads=num_heads, head_dim=head_dim)
    # Single pallas_call, no grid: every operand is one whole-array VMEM block
    # (~100 KiB f32 total), so weights DMA once and activations stay resident across layers.
    return pl.pallas_call(
        kern,
        out_shape=jax.ShapeDtypeStruct((B, N, D), jnp.float32),
    )(
        x, behaviors,
        params["w_bm1"], params["b_bm1"], params["w_bm2"], params["b_bm2"],
        params["ln1_g"], params["ln1_b"], params["w_qkv"], params["w_ao"], params["b_ao"],
        params["ln2_g"], params["ln2_b"],
        params["w_ff1"], params["b_ff1"], params["w_ff2"], params["b_ff2"],
    )


# ----------------------------------------------------------------------------- pure-JAX reference
def reference_forward(x, behaviors, params, num_heads, head_dim):
    B, N, D = x.shape
    H, hd = num_heads, head_dim
    inner = H * hd
    out = x
    L = params["w_qkv"].shape[0]
    for l in range(L):
        st = jnp.tanh(behaviors @ params["w_bm1"][l] + params["b_bm1"][l])
        st = jnp.tanh(st @ params["w_bm2"][l] + params["b_bm2"][l])
        y = out + st[:, None, :]
        yn = _layernorm(y, params["ln1_g"][l], params["ln1_b"][l])
        qkv = yn @ params["w_qkv"][l]
        q, k, v = jnp.split(qkv, 3, axis=-1)

        def heads(t):
            return t.reshape(B, N, H, hd).transpose(0, 2, 1, 3)

        qh, kh, vh = heads(q), heads(k), heads(v)
        s = jnp.einsum("bhnd,bhmd->bhnm", qh, kh) / math.sqrt(hd)
        a = jax.nn.softmax(s, axis=-1)
        o = jnp.einsum("bhnm,bhmd->bhnd", a, vh).transpose(0, 2, 1, 3).reshape(B, N, inner)
        attn = o @ params["w_ao"][l] + params["b_ao"][l]
        y2 = y + attn
        z = _layernorm(y2, params["ln2_g"][l], params["ln2_b"][l])
        h1 = _gelu_exact(z @ params["w_ff1"][l] + params["b_ff1"][l])
        out = y2 + h1 @ params["w_ff2"][l] + params["b_ff2"][l]
    return out


# ----------------------------------------------------------------------------- parameters (stacked over depth)
def init_params(key, depth, emb_dim, num_heads, head_dim, mlp_dim, bmlp_in):
    inner = num_heads * head_dim

    def tn(k, shape):
        return 0.02 * jax.random.normal(k, shape, jnp.float32)

    ks = jax.random.split(key, 6)
    return dict(
        ln1_g=jnp.ones((depth, 1, emb_dim), jnp.float32),
        ln1_b=jnp.zeros((depth, 1, emb_dim), jnp.float32),
        w_qkv=tn(ks[0], (depth, emb_dim, 3 * inner)),                 # to_qkv (bias=False)
        w_ao=tn(ks[1], (depth, inner, emb_dim)),
        b_ao=jnp.zeros((depth, 1, emb_dim), jnp.float32),
        ln2_g=jnp.ones((depth, 1, emb_dim), jnp.float32),
        ln2_b=jnp.zeros((depth, 1, emb_dim), jnp.float32),
        w_ff1=tn(ks[2], (depth, emb_dim, mlp_dim)),
        b_ff1=jnp.zeros((depth, 1, mlp_dim), jnp.float32),
        w_ff2=tn(ks[3], (depth, mlp_dim, emb_dim)),
        b_ff2=jnp.zeros((depth, 1, emb_dim), jnp.float32),
        w_bm1=tn(ks[4], (depth, bmlp_in, emb_dim // 2)),              # BehaviorMLP layer 1
        b_bm1=jnp.zeros((depth, 1, emb_dim // 2), jnp.float32),
        w_bm2=tn(ks[5], (depth, emb_dim // 2, emb_dim)),              # BehaviorMLP layer 2
        b_bm2=jnp.zeros((depth, 1, emb_dim), jnp.float32),
    )


# ----------------------------------------------------------------------------- main
if __name__ == "__main__":
    # Config (dimension='spatial'): num_patches=16, emb_dim=32, depth=2, num_heads=2,
    # head_dim=16, mlp_dim=64, behavior_mode=3, temporal_dim=4, pos_encoding=0.
    B, N, D = 2, 16, 32
    num_heads, head_dim, mlp_dim = 2, 16, 64
    temporal_dim = 4
    bmlp_in = 2 * temporal_dim          # behavior_mode=3 -> in_dim = 2 * temporal_dim
    depth = 2

    key = jax.random.PRNGKey(0)
    kx, kb, kpc, kp = jax.random.split(key, 4)
    x = jax.random.normal(kx, (B, N, D), jnp.float32)
    behaviors = jax.random.normal(kb, (B, bmlp_in), jnp.float32)
    pupil_centers = jax.random.normal(kpc, (B, bmlp_in), jnp.float32)   # unused (mode 3)

    params = init_params(kp, depth, D, num_heads, head_dim, mlp_dim, bmlp_in)

    out = transformer_forward(x, behaviors, pupil_centers, params, num_heads, head_dim)
    out = jax.block_until_ready(out)

    ref = reference_forward(x, behaviors, params, num_heads, head_dim)
    np.testing.assert_allclose(np.asarray(out), np.asarray(ref), rtol=1e-4, atol=1e-4)

    print("KERNEL_OK")
</pallas_src>

<mosaic_0001>
module attributes {stable_mosaic.version = 11 : i64} {
  func.func @fused_transformer_kernel(%arg0: memref<2x16x32xf32, #tpu.memory_space<vmem>>, %arg1: memref<2x8xf32, #tpu.memory_space<vmem>>, %arg2: memref<2x8x16xf32, #tpu.memory_space<vmem>>, %arg3: memref<2x1x16xf32, #tpu.memory_space<vmem>>, %arg4: memref<2x16x32xf32, #tpu.memory_space<vmem>>, %arg5: memref<2x1x32xf32, #tpu.memory_space<vmem>>, %arg6: memref<2x1x32xf32, #tpu.memory_space<vmem>>, %arg7: memref<2x1x32xf32, #tpu.memory_space<vmem>>, %arg8: memref<2x32x96xf32, #tpu.memory_space<vmem>>, %arg9: memref<2x32x32xf32, #tpu.memory_space<vmem>>, %arg10: memref<2x1x32xf32, #tpu.memory_space<vmem>>, %arg11: memref<2x1x32xf32, #tpu.memory_space<vmem>>, %arg12: memref<2x1x32xf32, #tpu.memory_space<vmem>>, %arg13: memref<2x32x64xf32, #tpu.memory_space<vmem>>, %arg14: memref<2x1x64xf32, #tpu.memory_space<vmem>>, %arg15: memref<2x64x32xf32, #tpu.memory_space<vmem>>, %arg16: memref<2x1x32xf32, #tpu.memory_space<vmem>>, %arg17: memref<2x16x32xf32, #tpu.memory_space<vmem>>) attributes {dimension_semantics = [], scalar_prefetch = 0 : i64, scratch_operands = 0 : i64, tpu.core_type = #tpu.core_type<tc>} {
    %c0 = arith.constant 0 : index
    %c0_0 = arith.constant 0 : index
    %0 = vector.load %arg1[%c0, %c0_0] : memref<2x8xf32, #tpu.memory_space<vmem>>, vector<2x8xf32>
    %1 = vector.shape_cast %0 : vector<2x8xf32> to vector<1x2x8xf32>
    %2 = vector.shape_cast %1 : vector<1x2x8xf32> to vector<1x2x8xf32>
    %3 = vector.broadcast %2 : vector<1x2x8xf32> to vector<2x2x8xf32>
    %c0_1 = arith.constant 0 : index
    %c0_2 = arith.constant 0 : index
    %c0_3 = arith.constant 0 : index
    %4 = vector.load %arg2[%c0_1, %c0_2, %c0_3] : memref<2x8x16xf32, #tpu.memory_space<vmem>>, vector<2x8x16xf32>
    "tpu.trace_start"() <{level = 10 : i32, message = "lbi,lio->lbo"}> : () -> ()
    %cst = arith.constant dense<0.000000e+00> : vector<2x2x16xf32>
    %5 = tpu.matmul %3, %4, %cst {dimension_numbers = #tpu.dot_dimension_numbers<[2], [1], [1], [2], [0, 0, 0, 1, 1, 2], [0], [0]>} : vector<2x2x8xf32>, vector<2x8x16xf32>, vector<2x2x16xf32> -> vector<2x2x16xf32>
    "tpu.trace_stop"() : () -> ()
    %c0_4 = arith.constant 0 : index
    %c0_5 = arith.constant 0 : index
    %c0_6 = arith.constant 0 : index
    %6 = vector.load %arg3[%c0_4, %c0_5, %c0_6] : memref<2x1x16xf32, #tpu.memory_space<vmem>>, vector<2x1x16xf32>
    %7 = vector.broadcast %6 : vector<2x1x16xf32> to vector<2x2x16xf32>
    %8 = arith.addf %5, %7 : vector<2x2x16xf32>
    %9 = math.tanh %8 : vector<2x2x16xf32>
    %c0_7 = arith.constant 0 : index
    %c0_8 = arith.constant 0 : index
    %c0_9 = arith.constant 0 : index
    %10 = vector.load %arg4[%c0_7, %c0_8, %c0_9] : memref<2x16x32xf32, #tpu.memory_space<vmem>>, vector<2x16x32xf32>
    "tpu.trace_start"() <{level = 10 : i32, message = "lbi,lio->lbo"}> : () -> ()
    %cst_10 = arith.constant dense<0.000000e+00> : vector<2x2x32xf32>
    %11 = tpu.matmul %9, %10, %cst_10 {dimension_numbers = #tpu.dot_dimension_numbers<[2], [1], [1], [2], [0, 0, 0, 1, 1, 2], [0], [0]>} : vector<2x2x16xf32>, vector<2x16x32xf32>, vector<2x2x32xf32> -> vector<2x2x32xf32>
    "tpu.trace_stop"() : () -> ()
    %c0_11 = arith.constant 0 : index
    %c0_12 = arith.constant 0 : index
    %c0_13 = arith.constant 0 : index
    %12 = vector.load %arg5[%c0_11, %c0_12, %c0_13] : memref<2x1x32xf32, #tpu.memory_space<vmem>>, vector<2x1x32xf32>
    %13 = vector.broadcast %12 : vector<2x1x32xf32> to vector<2x2x32xf32>
    %14 = arith.addf %11, %13 : vector<2x2x32xf32>
    %15 = math.tanh %14 : vector<2x2x32xf32>
    %c0_14 = arith.constant 0 : index
    %c0_15 = arith.constant 0 : index
    %c0_16 = arith.constant 0 : index
    %16 = vector.load %arg0[%c0_14, %c0_15, %c0_16] : memref<2x16x32xf32, #tpu.memory_space<vmem>>, vector<2x16x32xf32>
    %17 = vector.shape_cast %16 : vector<2x16x32xf32> to vector<32x32xf32>
    %18 = vector.shape_cast %17 : vector<32x32xf32> to vector<2x16x32xf32>
    %19 = vector.extract_strided_slice %15 {offsets = [0, 0, 0], sizes = [1, 2, 32], strides = [1, 1, 1]} : vector<2x2x32xf32> to vector<1x2x32xf32>
    %20 = vector.shape_cast %19 : vector<1x2x32xf32> to vector<2x32xf32>
    %21 = vector.shape_cast %20 : vector<2x32xf32> to vector<2x1x32xf32>
    %22 = vector.broadcast %21 : vector<2x1x32xf32> to vector<2x16x32xf32>
    %23 = arith.addf %18, %22 : vector<2x16x32xf32>
    %24 = vector.shape_cast %23 : vector<2x16x32xf32> to vector<32x32xf32>
    %c0_17 = arith.constant 0 : index
    %c0_18 = arith.constant 0 : index
    %c0_19 = arith.constant 0 : index
    %25 = vector.load %arg6[%c0_17, %c0_18, %c0_19] : memref<2x1x32xf32, #tpu.memory_space<vmem>>, vector<1x1x32xf32>
    %26 = vector.shape_cast %25 : vector<1x1x32xf32> to vector<1x32xf32>
    %c0_20 = arith.constant 0 : index
    %c0_21 = arith.constant 0 : index
    %c0_22 = arith.constant 0 : index
    %27 = vector.load %arg7[%c0_20, %c0_21, %c0_22] : memref<2x1x32xf32, #tpu.memory_space<vmem>>, vector<1x1x32xf32>
    %28 = vector.shape_cast %27 : vector<1x1x32xf32> to vector<1x32xf32>
    %cst_23 = arith.constant dense<0.000000e+00> : vector<32xf32>
    %29 = vector.multi_reduction <add>, %24, %cst_23 [1] : vector<32x32xf32> to vector<32xf32>
    %30 = vector.shape_cast %29 : vector<32xf32> to vector<32x1xf32>
    %cst_24 = arith.constant 3.125000e-02 : f32
    %31 = vector.broadcast %cst_24 : f32 to vector<32x1xf32>
    %32 = arith.mulf %30, %31 : vector<32x1xf32>
    %33 = vector.broadcast %32 : vector<32x1xf32> to vector<32x32xf32>
    %34 = arith.subf %24, %33 : vector<32x32xf32>
    %35 = arith.mulf %34, %34 : vector<32x32xf32>
    %cst_25 = arith.constant dense<0.000000e+00> : vector<32xf32>
    %36 = vector.multi_reduction <add>, %35, %cst_25 [1] : vector<32x32xf32> to vector<32xf32>
    %37 = vector.shape_cast %36 : vector<32xf32> to vector<32x1xf32>
    %cst_26 = arith.constant 3.125000e-02 : f32
    %38 = vector.broadcast %cst_26 : f32 to vector<32x1xf32>
    %39 = arith.mulf %37, %38 : vector<32x1xf32>
    %cst_27 = arith.constant 9.99999974E-6 : f32
    %40 = vector.broadcast %cst_27 : f32 to vector<32x1xf32>
    %41 = arith.addf %39, %40 : vector<32x1xf32>
    %42 = math.rsqrt %41 : vector<32x1xf32>
    %43 = vector.broadcast %42 : vector<32x1xf32> to vector<32x32xf32>
    %44 = arith.mulf %34, %43 : vector<32x32xf32>
    %45 = vector.broadcast %26 : vector<1x32xf32> to vector<32x32xf32>
    %46 = arith.mulf %44, %45 : vector<32x32xf32>
    %47 = vector.broadcast %28 : vector<1x32xf32> to vector<32x32xf32>
    %48 = arith.addf %46, %47 : vector<32x32xf32>
    %c0_28 = arith.constant 0 : index
    %c0_29 = arith.constant 0 : index
    %c0_30 = arith.constant 0 : index
    %49 = vector.load %arg8[%c0_28, %c0_29, %c0_30] : memref<2x32x96xf32, #tpu.memory_space<vmem>>, vector<1x32x96xf32>
    %50 = vector.shape_cast %49 : vector<1x32x96xf32> to vector<32x96xf32>
    %cst_31 = arith.constant dense<0.000000e+00> : vector<32x96xf32>
    %51 = tpu.matmul %48, %50, %cst_31 {dimension_numbers = #tpu.dot_dimension_numbers<[1], [0], [0], [1], [0, 0, 1, 1], [], []>} : vector<32x32xf32>, vector<32x96xf32>, vector<32x96xf32> -> vector<32x96xf32>
    %52 = vector.extract_strided_slice %51 {offsets = [0, 0], sizes = [32, 16], strides = [1, 1]} : vector<32x96xf32> to vector<32x16xf32>
    %53 = vector.shape_cast %52 : vector<32x16xf32> to vector<2x16x16xf32>
    %54 = vector.extract_strided_slice %51 {offsets = [0, 32], sizes = [32, 16], strides = [1, 1]} : vector<32x96xf32> to vector<32x16xf32>
    %55 = vector.shape_cast %54 : vector<32x16xf32> to vector<2x16x16xf32>
    %56 = vector.extract_strided_slice %51 {offsets = [0, 64], sizes = [32, 16], strides = [1, 1]} : vector<32x96xf32> to vector<32x16xf32>
    %57 = vector.shape_cast %56 : vector<32x16xf32> to vector<2x16x16xf32>
    "tpu.trace_start"() <{level = 10 : i32, message = "bnd,bmd->bnm"}> : () -> ()
    %cst_32 = arith.constant dense<0.000000e+00> : vector<2x16x16xf32>
    %58 = tpu.matmul %53, %55, %cst_32 {dimension_numbers = #tpu.dot_dimension_numbers<[2], [2], [1], [1], [0, 0, 0, 1, 1, 1], [0], [0]>} : vector<2x16x16xf32>, vector<2x16x16xf32>, vector<2x16x16xf32> -> vector<2x16x16xf32>
    "tpu.trace_stop"() : () -> ()
    %cst_33 = arith.constant 2.500000e-01 : f32
    %59 = vector.broadcast %cst_33 : f32 to vector<2x16x16xf32>
    %60 = arith.mulf %58, %59 : vector<2x16x16xf32>
    %cst_34 = arith.constant dense<0xFF800000> : vector<2x16xf32>
    %61 = vector.multi_reduction <maximumf>, %60, %cst_34 [2] : vector<2x16x16xf32> to vector<2x16xf32>
    %62 = vector.shape_cast %61 : vector<2x16xf32> to vector<2x16x1xf32>
    %63 = vector.broadcast %62 : vector<2x16x1xf32> to vector<2x16x16xf32>
    %64 = arith.subf %60, %63 : vector<2x16x16xf32>
    %65 = math.exp %64 : vector<2x16x16xf32>
    %cst_35 = arith.constant dense<0.000000e+00> : vector<2x16xf32>
    %66 = vector.multi_reduction <add>, %65, %cst_35 [2] : vector<2x16x16xf32> to vector<2x16xf32>
    %67 = vector.shape_cast %66 : vector<2x16xf32> to vector<2x16x1xf32>
    %68 = tpu.reciprocal %67 : vector<2x16x1xf32> -> vector<2x16x1xf32>
    %69 = vector.broadcast %68 : vector<2x16x1xf32> to vector<2x16x16xf32>
    %70 = arith.mulf %65, %69 : vector<2x16x16xf32>
    "tpu.trace_start"() <{level = 10 : i32, message = "bnm,bmd->bnd"}> : () -> ()
    %cst_36 = arith.constant dense<0.000000e+00> : vector<2x16x16xf32>
    %71 = tpu.matmul %70, %57, %cst_36 {dimension_numbers = #tpu.dot_dimension_numbers<[2], [1], [1], [2], [0, 0, 0, 1, 1, 2], [0], [0]>} : vector<2x16x16xf32>, vector<2x16x16xf32>, vector<2x16x16xf32> -> vector<2x16x16xf32>
    "tpu.trace_stop"() : () -> ()
    %72 = vector.extract_strided_slice %51 {offsets = [0, 16], sizes = [32, 16], strides = [1, 1]} : vector<32x96xf32> to vector<32x16xf32>
    %73 = vector.shape_cast %72 : vector<32x16xf32> to vector<2x16x16xf32>
    %74 = vector.extract_strided_slice %51 {offsets = [0, 48], sizes = [32, 16], strides = [1, 1]} : vector<32x96xf32> to vector<32x16xf32>
    %75 = vector.shape_cast %74 : vector<32x16xf32> to vector<2x16x16xf32>
    %76 = vector.extract_strided_slice %51 {offsets = [0, 80], sizes = [32, 16], strides = [1, 1]} : vector<32x96xf32> to vector<32x16xf32>
    %77 = vector.shape_cast %76 : vector<32x16xf32> to vector<2x16x16xf32>
    "tpu.trace_start"() <{level = 10 : i32, message = "bnd,bmd->bnm"}> : () -> ()
    %cst_37 = arith.constant dense<0.000000e+00> : vector<2x16x16xf32>
    %78 = tpu.matmul %73, %75, %cst_37 {dimension_numbers = #tpu.dot_dimension_numbers<[2], [2], [1], [1], [0, 0, 0, 1, 1, 1], [0], [0]>} : vector<2x16x16xf32>, vector<2x16x16xf32>, vector<2x16x16xf32> -> vector<2x16x16xf32>
    "tpu.trace_stop"() : () -> ()
    %cst_38 = arith.constant 2.500000e-01 : f32
    %79 = vector.broadcast %cst_38 : f32 to vector<2x16x16xf32>
    %80 = arith.mulf %78, %79 : vector<2x16x16xf32>
    %cst_39 = arith.constant dense<0xFF800000> : vector<2x16xf32>
    %81 = vector.multi_reduction <maximumf>, %80, %cst_39 [2] : vector<2x16x16xf32> to vector<2x16xf32>
    %82 = vector.shape_cast %81 : vector<2x16xf32> to vector<2x16x1xf32>
    %83 = vector.broadcast %82 : vector<2x16x1xf32> to vector<2x16x16xf32>
    %84 = arith.subf %80, %83 : vector<2x16x16xf32>
    %85 = math.exp %84 : vector<2x16x16xf32>
    %cst_40 = arith.constant dense<0.000000e+00> : vector<2x16xf32>
    %86 = vector.multi_reduction <add>, %85, %cst_40 [2] : vector<2x16x16xf32> to vector<2x16xf32>
    %87 = vector.shape_cast %86 : vector<2x16xf32> to vector<2x16x1xf32>
    %88 = tpu.reciprocal %87 : vector<2x16x1xf32> -> vector<2x16x1xf32>
    %89 = vector.broadcast %88 : vector<2x16x1xf32> to vector<2x16x16xf32>
    %90 = arith.mulf %85, %89 : vector<2x16x16xf32>
    "tpu.trace_start"() <{level = 10 : i32, message = "bnm,bmd->bnd"}> : () -> ()
    %cst_41 = arith.constant dense<0.000000e+00> : vector<2x16x16xf32>
    %91 = tpu.matmul %90, %77, %cst_41 {dimension_numbers = #tpu.dot_dimension_numbers<[2], [1], [1], [2], [0, 0, 0, 1, 1, 2], [0], [0]>} : vector<2x16x16xf32>, vector<2x16x16xf32>, vector<2x16x16xf32> -> vector<2x16x16xf32>
    "tpu.trace_stop"() : () -> ()
    %92 = tpu.concatenate %71, %91 in 2 : vector<2x16x16xf32>, vector<2x16x16xf32> -> vector<2x16x32xf32>
    %93 = vector.shape_cast %92 : vector<2x16x32xf32> to vector<32x32xf32>
    %c0_42 = arith.constant 0 : index
    %c0_43 = arith.constant 0 : index
    %c0_44 = arith.constant 0 : index
    %94 = vector.load %arg9[%c0_42, %c0_43, %c0_44] : memref<2x32x32xf32, #tpu.memory_space<vmem>>, vector<1x32x32xf32>
    %95 = vector.shape_cast %94 : vector<1x32x32xf32> to vector<32x32xf32>
    %cst_45 = arith.constant dense<0.000000e+00> : vector<32x32xf32>
    %96 = tpu.matmul %93, %95, %cst_45 {dimension_numbers = #tpu.dot_dimension_numbers<[1], [0], [0], [1], [0, 0, 1, 1], [], []>} : vector<32x32xf32>, vector<32x32xf32>, vector<32x32xf32> -> vector<32x32xf32>
    %c0_46 = arith.constant 0 : index
    %c0_47 = arith.constant 0 : index
    %c0_48 = arith.constant 0 : index
    %97 = vector.load %arg10[%c0_46, %c0_47, %c0_48] : memref<2x1x32xf32, #tpu.memory_space<vmem>>, vector<1x1x32xf32>
    %98 = vector.shape_cast %97 : vector<1x1x32xf32> to vector<1x32xf32>
    %99 = vector.broadcast %98 : vector<1x32xf32> to vector<32x32xf32>
    %100 = arith.addf %96, %99 : vector<32x32xf32>
    %101 = arith.addf %24, %100 : vector<32x32xf32>
    %c0_49 = arith.constant 0 : index
    %c0_50 = arith.constant 0 : index
    %c0_51 = arith.constant 0 : index
    %102 = vector.load %arg11[%c0_49, %c0_50, %c0_51] : memref<2x1x32xf32, #tpu.memory_space<vmem>>, vector<1x1x32xf32>
    %103 = vector.shape_cast %102 : vector<1x1x32xf32> to vector<1x32xf32>
    %c0_52 = arith.constant 0 : index
    %c0_53 = arith.constant 0 : index
    %c0_54 = arith.constant 0 : index
    %104 = vector.load %arg12[%c0_52, %c0_53, %c0_54] : memref<2x1x32xf32, #tpu.memory_space<vmem>>, vector<1x1x32xf32>
    %105 = vector.shape_cast %104 : vector<1x1x32xf32> to vector<1x32xf32>
    %cst_55 = arith.constant dense<0.000000e+00> : vector<32xf32>
    %106 = vector.multi_reduction <add>, %101, %cst_55 [1] : vector<32x32xf32> to vector<32xf32>
    %107 = vector.shape_cast %106 : vector<32xf32> to vector<32x1xf32>
    %cst_56 = arith.constant 3.125000e-02 : f32
    %108 = vector.broadcast %cst_56 : f32 to vector<32x1xf32>
    %109 = arith.mulf %107, %108 : vector<32x1xf32>
    %110 = vector.broadcast %109 : vector<32x1xf32> to vector<32x32xf32>
    %111 = arith.subf %101, %110 : vector<32x32xf32>
    %112 = arith.mulf %111, %111 : vector<32x32xf32>
    %cst_57 = arith.constant dense<0.000000e+00> : vector<32xf32>
    %113 = vector.multi_reduction <add>, %112, %cst_57 [1] : vector<32x32xf32> to vector<32xf32>
    %114 = vector.shape_cast %113 : vector<32xf32> to vector<32x1xf32>
    %cst_58 = arith.constant 3.125000e-02 : f32
    %115 = vector.broadcast %cst_58 : f32 to vector<32x1xf32>
    %116 = arith.mulf %114, %115 : vector<32x1xf32>
    %cst_59 = arith.constant 9.99999974E-6 : f32
    %117 = vector.broadcast %cst_59 : f32 to vector<32x1xf32>
    %118 = arith.addf %116, %117 : vector<32x1xf32>
    %119 = math.rsqrt %118 : vector<32x1xf32>
    %120 = vector.broadcast %119 : vector<32x1xf32> to vector<32x32xf32>
    %121 = arith.mulf %111, %120 : vector<32x32xf32>
    %122 = vector.broadcast %103 : vector<1x32xf32> to vector<32x32xf32>
    %123 = arith.mulf %121, %122 : vector<32x32xf32>
    %124 = vector.broadcast %105 : vector<1x32xf32> to vector<32x32xf32>
    %125 = arith.addf %123, %124 : vector<32x32xf32>
    %c0_60 = arith.constant 0 : index
    %c0_61 = arith.constant 0 : index
    %c0_62 = arith.constant 0 : index
    %126 = vector.load %arg13[%c0_60, %c0_61, %c0_62] : memref<2x32x64xf32, #tpu.memory_space<vmem>>, vector<1x32x64xf32>
    %127 = vector.shape_cast %126 : vector<1x32x64xf32> to vector<32x64xf32>
    %cst_63 = arith.constant dense<0.000000e+00> : vector<32x64xf32>
    %128 = tpu.matmul %125, %127, %cst_63 {dimension_numbers = #tpu.dot_dimension_numbers<[1], [0], [0], [1], [0, 0, 1, 1], [], []>} : vector<32x32xf32>, vector<32x64xf32>, vector<32x64xf32> -> vector<32x64xf32>
    %c0_64 = arith.constant 0 : index
    %c0_65 = arith.constant 0 : index
    %c0_66 = arith.constant 0 : index
    %129 = vector.load %arg14[%c0_64, %c0_65, %c0_66] : memref<2x1x64xf32, #tpu.memory_space<vmem>>, vector<1x1x64xf32>
    %130 = vector.shape_cast %129 : vector<1x1x64xf32> to vector<1x64xf32>
    %131 = vector.broadcast %130 : vector<1x64xf32> to vector<32x64xf32>
    %132 = arith.addf %128, %131 : vector<32x64xf32>
    %cst_67 = arith.constant 5.000000e-01 : f32
    %133 = vector.broadcast %cst_67 : f32 to vector<32x64xf32>
    %134 = arith.mulf %133, %132 : vector<32x64xf32>
    %cst_68 = arith.constant 0.707106769 : f32
    %135 = vector.broadcast %cst_68 : f32 to vector<32x64xf32>
    %136 = arith.mulf %132, %135 : vector<32x64xf32>
    %137 = math.erf %136 : vector<32x64xf32>
    %cst_69 = arith.constant 1.000000e+00 : f32
    %138 = vector.broadcast %cst_69 : f32 to vector<32x64xf32>
    %139 = arith.addf %138, %137 : vector<32x64xf32>
    %140 = arith.mulf %134, %139 : vector<32x64xf32>
    %c0_70 = arith.constant 0 : index
    %c0_71 = arith.constant 0 : index
    %c0_72 = arith.constant 0 : index
    %141 = vector.load %arg15[%c0_70, %c0_71, %c0_72] : memref<2x64x32xf32, #tpu.memory_space<vmem>>, vector<1x64x32xf32>
    %142 = vector.shape_cast %141 : vector<1x64x32xf32> to vector<64x32xf32>
    %cst_73 = arith.constant dense<0.000000e+00> : vector<32x32xf32>
    %143 = tpu.matmul %140, %142, %cst_73 {dimension_numbers = #tpu.dot_dimension_numbers<[1], [0], [0], [1], [0, 0, 1, 1], [], []>} : vector<32x64xf32>, vector<64x32xf32>, vector<32x32xf32> -> vector<32x32xf32>
    %c0_74 = arith.constant 0 : index
    %c0_75 = arith.constant 0 : index
    %c0_76 = arith.constant 0 : index
    %144 = vector.load %arg16[%c0_74, %c0_75, %c0_76] : memref<2x1x32xf32, #tpu.memory_space<vmem>>, vector<1x1x32xf32>
    %145 = vector.shape_cast %144 : vector<1x1x32xf32> to vector<1x32xf32>
    %146 = vector.broadcast %145 : vector<1x32xf32> to vector<32x32xf32>
    %147 = arith.addf %143, %146 : vector<32x32xf32>
    %148 = arith.addf %101, %147 : vector<32x32xf32>
    %149 = vector.shape_cast %148 : vector<32x32xf32> to vector<2x16x32xf32>
    %150 = vector.extract_strided_slice %15 {offsets = [1, 0, 0], sizes = [1, 2, 32], strides = [1, 1, 1]} : vector<2x2x32xf32> to vector<1x2x32xf32>
    %151 = vector.shape_cast %150 : vector<1x2x32xf32> to vector<2x32xf32>
    %152 = vector.shape_cast %151 : vector<2x32xf32> to vector<2x1x32xf32>
    %153 = vector.broadcast %152 : vector<2x1x32xf32> to vector<2x16x32xf32>
    %154 = arith.addf %149, %153 : vector<2x16x32xf32>
    %155 = vector.shape_cast %154 : vector<2x16x32xf32> to vector<32x32xf32>
    %c1 = arith.constant 1 : index
    %c0_77 = arith.constant 0 : index
    %c0_78 = arith.constant 0 : index
    %156 = vector.load %arg6[%c1, %c0_77, %c0_78] : memref<2x1x32xf32, #tpu.memory_space<vmem>>, vector<1x1x32xf32>
    %157 = vector.shape_cast %156 : vector<1x1x32xf32> to vector<1x32xf32>
    %c1_79 = arith.constant 1 : index
    %c0_80 = arith.constant 0 : index
    %c0_81 = arith.constant 0 : index
    %158 = vector.load %arg7[%c1_79, %c0_80, %c0_81] : memref<2x1x32xf32, #tpu.memory_space<vmem>>, vector<1x1x32xf32>
    %159 = vector.shape_cast %158 : vector<1x1x32xf32> to vector<1x32xf32>
    %cst_82 = arith.constant dense<0.000000e+00> : vector<32xf32>
    %160 = vector.multi_reduction <add>, %155, %cst_82 [1] : vector<32x32xf32> to vector<32xf32>
    %161 = vector.shape_cast %160 : vector<32xf32> to vector<32x1xf32>
    %cst_83 = arith.constant 3.125000e-02 : f32
    %162 = vector.broadcast %cst_83 : f32 to vector<32x1xf32>
    %163 = arith.mulf %161, %162 : vector<32x1xf32>
    %164 = vector.broadcast %163 : vector<32x1xf32> to vector<32x32xf32>
    %165 = arith.subf %155, %164 : vector<32x32xf32>
    %166 = arith.mulf %165, %165 : vector<32x32xf32>
    %cst_84 = arith.constant dense<0.000000e+00> : vector<32xf32>
    %167 = vector.multi_reduction <add>, %166, %cst_84 [1] : vector<32x32xf32> to vector<32xf32>
    %168 = vector.shape_cast %167 : vector<32xf32> to vector<32x1xf32>
    %cst_85 = arith.constant 3.125000e-02 : f32
    %169 = vector.broadcast %cst_85 : f32 to vector<32x1xf32>
    %170 = arith.mulf %168, %169 : vector<32x1xf32>
    %cst_86 = arith.constant 9.99999974E-6 : f32
    %171 = vector.broadcast %cst_86 : f32 to vector<32x1xf32>
    %172 = arith.addf %170, %171 : vector<32x1xf32>
    %173 = math.rsqrt %172 : vector<32x1xf32>
    %174 = vector.broadcast %173 : vector<32x1xf32> to vector<32x32xf32>
    %175 = arith.mulf %165, %174 : vector<32x32xf32>
    %176 = vector.broadcast %157 : vector<1x32xf32> to vector<32x32xf32>
    %177 = arith.mulf %175, %176 : vector<32x32xf32>
    %178 = vector.broadcast %159 : vector<1x32xf32> to vector<32x32xf32>
    %179 = arith.addf %177, %178 : vector<32x32xf32>
    %c1_87 = arith.constant 1 : index
    %c0_88 = arith.constant 0 : index
    %c0_89 = arith.constant 0 : index
    %180 = vector.load %arg8[%c1_87, %c0_88, %c0_89] : memref<2x32x96xf32, #tpu.memory_space<vmem>>, vector<1x32x96xf32>
    %181 = vector.shape_cast %180 : vector<1x32x96xf32> to vector<32x96xf32>
    %cst_90 = arith.constant dense<0.000000e+00> : vector<32x96xf32>
    %182 = tpu.matmul %179, %181, %cst_90 {dimension_numbers = #tpu.dot_dimension_numbers<[1], [0], [0], [1], [0, 0, 1, 1], [], []>} : vector<32x32xf32>, vector<32x96xf32>, vector<32x96xf32> -> vector<32x96xf32>
    %183 = vector.extract_strided_slice %182 {offsets = [0, 0], sizes = [32, 16], strides = [1, 1]} : vector<32x96xf32> to vector<32x16xf32>
    %184 = vector.shape_cast %183 : vector<32x16xf32> to vector<2x16x16xf32>
    %185 = vector.extract_strided_slice %182 {offsets = [0, 32], sizes = [32, 16], strides = [1, 1]} : vector<32x96xf32> to vector<32x16xf32>
    %186 = vector.shape_cast %185 : vector<32x16xf32> to vector<2x16x16xf32>
    %187 = vector.extract_strided_slice %182 {offsets = [0, 64], sizes = [32, 16], strides = [1, 1]} : vector<32x96xf32> to vector<32x16xf32>
    %188 = vector.shape_cast %187 : vector<32x16xf32> to vector<2x16x16xf32>
    "tpu.trace_start"() <{level = 10 : i32, message = "bnd,bmd->bnm"}> : () -> ()
    %cst_91 = arith.constant dense<0.000000e+00> : vector<2x16x16xf32>
    %189 = tpu.matmul %184, %186, %cst_91 {dimension_numbers = #tpu.dot_dimension_numbers<[2], [2], [1], [1], [0, 0, 0, 1, 1, 1], [0], [0]>} : vector<2x16x16xf32>, vector<2x16x16xf32>, vector<2x16x16xf32> -> vector<2x16x16xf32>
    "tpu.trace_stop"() : () -> ()
    %cst_92 = arith.constant 2.500000e-01 : f32
    %190 = vector.broadcast %cst_92 : f32 to vector<2x16x16xf32>
    %191 = arith.mulf %189, %190 : vector<2x16x16xf32>
    %cst_93 = arith.constant dense<0xFF800000> : vector<2x16xf32>
    %192 = vector.multi_reduction <maximumf>, %191, %cst_93 [2] : vector<2x16x16xf32> to vector<2x16xf32>
    %193 = vector.shape_cast %192 : vector<2x16xf32> to vector<2x16x1xf32>
    %194 = vector.broadcast %193 : vector<2x16x1xf32> to vector<2x16x16xf32>
    %195 = arith.subf %191, %194 : vector<2x16x16xf32>
    %196 = math.exp %195 : vector<2x16x16xf32>
    %cst_94 = arith.constant dense<0.000000e+00> : vector<2x16xf32>
    %197 = vector.multi_reduction <add>, %196, %cst_94 [2] : vector<2x16x16xf32> to vector<2x16xf32>
    %198 = vector.shape_cast %197 : vector<2x16xf32> to vector<2x16x1xf32>
    %199 = tpu.reciprocal %198 : vector<2x16x1xf32> -> vector<2x16x1xf32>
    %200 = vector.broadcast %199 : vector<2x16x1xf32> to vector<2x16x16xf32>
    %201 = arith.mulf %196, %200 : vector<2x16x16xf32>
    "tpu.trace_start"() <{level = 10 : i32, message = "bnm,bmd->bnd"}> : () -> ()
    %cst_95 = arith.constant dense<0.000000e+00> : vector<2x16x16xf32>
    %202 = tpu.matmul %201, %188, %cst_95 {dimension_numbers = #tpu.dot_dimension_numbers<[2], [1], [1], [2], [0, 0, 0, 1, 1, 2], [0], [0]>} : vector<2x16x16xf32>, vector<2x16x16xf32>, vector<2x16x16xf32> -> vector<2x16x16xf32>
    "tpu.trace_stop"() : () -> ()
    %203 = vector.extract_strided_slice %182 {offsets = [0, 16], sizes = [32, 16], strides = [1, 1]} : vector<32x96xf32> to vector<32x16xf32>
    %204 = vector.shape_cast %203 : vector<32x16xf32> to vector<2x16x16xf32>
    %205 = vector.extract_strided_slice %182 {offsets = [0, 48], sizes = [32, 16], strides = [1, 1]} : vector<32x96xf32> to vector<32x16xf32>
    %206 = vector.shape_cast %205 : vector<32x16xf32> to vector<2x16x16xf32>
    %207 = vector.extract_strided_slice %182 {offsets = [0, 80], sizes = [32, 16], strides = [1, 1]} : vector<32x96xf32> to vector<32x16xf32>
    %208 = vector.shape_cast %207 : vector<32x16xf32> to vector<2x16x16xf32>
    "tpu.trace_start"() <{level = 10 : i32, message = "bnd,bmd->bnm"}> : () -> ()
    %cst_96 = arith.constant dense<0.000000e+00> : vector<2x16x16xf32>
    %209 = tpu.matmul %204, %206, %cst_96 {dimension_numbers = #tpu.dot_dimension_numbers<[2], [2], [1], [1], [0, 0, 0, 1, 1, 1], [0], [0]>} : vector<2x16x16xf32>, vector<2x16x16xf32>, vector<2x16x16xf32> -> vector<2x16x16xf32>
    "tpu.trace_stop"() : () -> ()
    %cst_97 = arith.constant 2.500000e-01 : f32
    %210 = vector.broadcast %cst_97 : f32 to vector<2x16x16xf32>
    %211 = arith.mulf %209, %210 : vector<2x16x16xf32>
    %cst_98 = arith.constant dense<0xFF800000> : vector<2x16xf32>
    %212 = vector.multi_reduction <maximumf>, %211, %cst_98 [2] : vector<2x16x16xf32> to vector<2x16xf32>
    %213 = vector.shape_cast %212 : vector<2x16xf32> to vector<2x16x1xf32>
    %214 = vector.broadcast %213 : vector<2x16x1xf32> to vector<2x16x16xf32>
    %215 = arith.subf %211, %214 : vector<2x16x16xf32>
    %216 = math.exp %215 : vector<2x16x16xf32>
    %cst_99 = arith.constant dense<0.000000e+00> : vector<2x16xf32>
    %217 = vector.multi_reduction <add>, %216, %cst_99 [2] : vector<2x16x16xf32> to vector<2x16xf32>
    %218 = vector.shape_cast %217 : vector<2x16xf32> to vector<2x16x1xf32>
    %219 = tpu.reciprocal %218 : vector<2x16x1xf32> -> vector<2x16x1xf32>
    %220 = vector.broadcast %219 : vector<2x16x1xf32> to vector<2x16x16xf32>
    %221 = arith.mulf %216, %220 : vector<2x16x16xf32>
    "tpu.trace_start"() <{level = 10 : i32, message = "bnm,bmd->bnd"}> : () -> ()
    %cst_100 = arith.constant dense<0.000000e+00> : vector<2x16x16xf32>
    %222 = tpu.matmul %221, %208, %cst_100 {dimension_numbers = #tpu.dot_dimension_numbers<[2], [1], [1], [2], [0, 0, 0, 1, 1, 2], [0], [0]>} : vector<2x16x16xf32>, vector<2x16x16xf32>, vector<2x16x16xf32> -> vector<2x16x16xf32>
    "tpu.trace_stop"() : () -> ()
    %223 = tpu.concatenate %202, %222 in 2 : vector<2x16x16xf32>, vector<2x16x16xf32> -> vector<2x16x32xf32>
    %224 = vector.shape_cast %223 : vector<2x16x32xf32> to vector<32x32xf32>
    %c1_101 = arith.constant 1 : index
    %c0_102 = arith.constant 0 : index
    %c0_103 = arith.constant 0 : index
    %225 = vector.load %arg9[%c1_101, %c0_102, %c0_103] : memref<2x32x32xf32, #tpu.memory_space<vmem>>, vector<1x32x32xf32>
    %226 = vector.shape_cast %225 : vector<1x32x32xf32> to vector<32x32xf32>
    %cst_104 = arith.constant dense<0.000000e+00> : vector<32x32xf32>
    %227 = tpu.matmul %224, %226, %cst_104 {dimension_numbers = #tpu.dot_dimension_numbers<[1], [0], [0], [1], [0, 0, 1, 1], [], []>} : vector<32x32xf32>, vector<32x32xf32>, vector<32x32xf32> -> vector<32x32xf32>
    %c1_105 = arith.constant 1 : index
    %c0_106 = arith.constant 0 : index
    %c0_107 = arith.constant 0 : index
    %228 = vector.load %arg10[%c1_105, %c0_106, %c0_107] : memref<2x1x32xf32, #tpu.memory_space<vmem>>, vector<1x1x32xf32>
    %229 = vector.shape_cast %228 : vector<1x1x32xf32> to vector<1x32xf32>
    %230 = vector.broadcast %229 : vector<1x32xf32> to vector<32x32xf32>
    %231 = arith.addf %227, %230 : vector<32x32xf32>
    %232 = arith.addf %155, %231 : vector<32x32xf32>
    %c1_108 = arith.constant 1 : index
    %c0_109 = arith.constant 0 : index
    %c0_110 = arith.constant 0 : index
    %233 = vector.load %arg11[%c1_108, %c0_109, %c0_110] : memref<2x1x32xf32, #tpu.memory_space<vmem>>, vector<1x1x32xf32>
    %234 = vector.shape_cast %233 : vector<1x1x32xf32> to vector<1x32xf32>
    %c1_111 = arith.constant 1 : index
    %c0_112 = arith.constant 0 : index
    %c0_113 = arith.constant 0 : index
    %235 = vector.load %arg12[%c1_111, %c0_112, %c0_113] : memref<2x1x32xf32, #tpu.memory_space<vmem>>, vector<1x1x32xf32>
    %236 = vector.shape_cast %235 : vector<1x1x32xf32> to vector<1x32xf32>
    %cst_114 = arith.constant dense<0.000000e+00> : vector<32xf32>
    %237 = vector.multi_reduction <add>, %232, %cst_114 [1] : vector<32x32xf32> to vector<32xf32>
    %238 = vector.shape_cast %237 : vector<32xf32> to vector<32x1xf32>
    %cst_115 = arith.constant 3.125000e-02 : f32
    %239 = vector.broadcast %cst_115 : f32 to vector<32x1xf32>
    %240 = arith.mulf %238, %239 : vector<32x1xf32>
    %241 = vector.broadcast %240 : vector<32x1xf32> to vector<32x32xf32>
    %242 = arith.subf %232, %241 : vector<32x32xf32>
    %243 = arith.mulf %242, %242 : vector<32x32xf32>
    %cst_116 = arith.constant dense<0.000000e+00> : vector<32xf32>
    %244 = vector.multi_reduction <add>, %243, %cst_116 [1] : vector<32x32xf32> to vector<32xf32>
    %245 = vector.shape_cast %244 : vector<32xf32> to vector<32x1xf32>
    %cst_117 = arith.constant 3.125000e-02 : f32
    %246 = vector.broadcast %cst_117 : f32 to vector<32x1xf32>
    %247 = arith.mulf %245, %246 : vector<32x1xf32>
    %cst_118 = arith.constant 9.99999974E-6 : f32
    %248 = vector.broadcast %cst_118 : f32 to vector<32x1xf32>
    %249 = arith.addf %247, %248 : vector<32x1xf32>
    %250 = math.rsqrt %249 : vector<32x1xf32>
    %251 = vector.broadcast %250 : vector<32x1xf32> to vector<32x32xf32>
    %252 = arith.mulf %242, %251 : vector<32x32xf32>
    %253 = vector.broadcast %234 : vector<1x32xf32> to vector<32x32xf32>
    %254 = arith.mulf %252, %253 : vector<32x32xf32>
    %255 = vector.broadcast %236 : vector<1x32xf32> to vector<32x32xf32>
    %256 = arith.addf %254, %255 : vector<32x32xf32>
    %c1_119 = arith.constant 1 : index
    %c0_120 = arith.constant 0 : index
    %c0_121 = arith.constant 0 : index
    %257 = vector.load %arg13[%c1_119, %c0_120, %c0_121] : memref<2x32x64xf32, #tpu.memory_space<vmem>>, vector<1x32x64xf32>
    %258 = vector.shape_cast %257 : vector<1x32x64xf32> to vector<32x64xf32>
    %cst_122 = arith.constant dense<0.000000e+00> : vector<32x64xf32>
    %259 = tpu.matmul %256, %258, %cst_122 {dimension_numbers = #tpu.dot_dimension_numbers<[1], [0], [0], [1], [0, 0, 1, 1], [], []>} : vector<32x32xf32>, vector<32x64xf32>, vector<32x64xf32> -> vector<32x64xf32>
    %c1_123 = arith.constant 1 : index
    %c0_124 = arith.constant 0 : index
    %c0_125 = arith.constant 0 : index
    %260 = vector.load %arg14[%c1_123, %c0_124, %c0_125] : memref<2x1x64xf32, #tpu.memory_space<vmem>>, vector<1x1x64xf32>
    %261 = vector.shape_cast %260 : vector<1x1x64xf32> to vector<1x64xf32>
    %262 = vector.broadcast %261 : vector<1x64xf32> to vector<32x64xf32>
    %263 = arith.addf %259, %262 : vector<32x64xf32>
    %cst_126 = arith.constant 5.000000e-01 : f32
    %264 = vector.broadcast %cst_126 : f32 to vector<32x64xf32>
    %265 = arith.mulf %264, %263 : vector<32x64xf32>
    %cst_127 = arith.constant 0.707106769 : f32
    %266 = vector.broadcast %cst_127 : f32 to vector<32x64xf32>
    %267 = arith.mulf %263, %266 : vector<32x64xf32>
    %268 = math.erf %267 : vector<32x64xf32>
    %cst_128 = arith.constant 1.000000e+00 : f32
    %269 = vector.broadcast %cst_128 : f32 to vector<32x64xf32>
    %270 = arith.addf %269, %268 : vector<32x64xf32>
    %271 = arith.mulf %265, %270 : vector<32x64xf32>
    %c1_129 = arith.constant 1 : index
    %c0_130 = arith.constant 0 : index
    %c0_131 = arith.constant 0 : index
    %272 = vector.load %arg15[%c1_129, %c0_130, %c0_131] : memref<2x64x32xf32, #tpu.memory_space<vmem>>, vector<1x64x32xf32>
    %273 = vector.shape_cast %272 : vector<1x64x32xf32> to vector<64x32xf32>
    %cst_132 = arith.constant dense<0.000000e+00> : vector<32x32xf32>
    %274 = tpu.matmul %271, %273, %cst_132 {dimension_numbers = #tpu.dot_dimension_numbers<[1], [0], [0], [1], [0, 0, 1, 1], [], []>} : vector<32x64xf32>, vector<64x32xf32>, vector<32x32xf32> -> vector<32x32xf32>
    %c1_133 = arith.constant 1 : index
    %c0_134 = arith.constant 0 : index
    %c0_135 = arith.constant 0 : index
    %275 = vector.load %arg16[%c1_133, %c0_134, %c0_135] : memref<2x1x32xf32, #tpu.memory_space<vmem>>, vector<1x1x32xf32>
    %276 = vector.shape_cast %275 : vector<1x1x32xf32> to vector<1x32xf32>
    %277 = vector.broadcast %276 : vector<1x32xf32> to vector<32x32xf32>
    %278 = arith.addf %274, %277 : vector<32x32xf32>
    %279 = arith.addf %232, %278 : vector<32x32xf32>
    %280 = vector.shape_cast %279 : vector<32x32xf32> to vector<2x16x32xf32>
    %c0_136 = arith.constant 0 : index
    %c0_137 = arith.constant 0 : index
    %c0_138 = arith.constant 0 : index
    %281 = vector.load %arg17[%c0_136, %c0_137, %c0_138] : memref<2x16x32xf32, #tpu.memory_space<vmem>>, vector<2x16x32xf32>
    tpu.vector_store %arg17[%c0_136, %c0_137, %c0_138], %280 {strides = array<i32>} : memref<2x16x32xf32, #tpu.memory_space<vmem>>, vector<2x16x32xf32>,
    return
  }
}

</mosaic_0001>

<bundles_post_ra>
// kernel: transformer_forward.1
= control target key start
LH: loop header
LB: loop body
LE: loop exit
PB: predicated region body
PF: predicated region fallthrough
CT: control target
= control target key end

     0   :  { %s5500_s0 = inlined_call_operand.hbm [shape: f32[2,16,32], index: 0, kind: input, shape index: {}]   ;;  %s5501_s1 = inlined_call_operand.vmem [shape: f32[2,8], index: 1, kind: input, shape index: {}]   ;;  %s5502_s2 = inlined_call_operand.hbm [shape: f32[2,8,16], index: 2, kind: input, shape index: {}]   ;;  %s5503_s3 = inlined_call_operand.hbm [shape: f32[2,1,16], index: 3, kind: input, shape index: {}]   ;;  %s5504_s4 = inlined_call_operand.vmem [shape: f32[2,16,32], index: 4, kind: input, shape index: {}]   ;;  %s5505_s5 = inlined_call_operand.hbm [shape: f32[2,1,32], index: 5, kind: input, shape index: {}]   ;;  %s5506_s6 = inlined_call_operand.hbm [shape: f32[2,1,32], index: 6, kind: input, shape index: {}]   ;;  %s5507_s7 = inlined_call_operand.hbm [shape: f32[2,1,32], index: 7, kind: input, shape index: {}]   ;;  %s5508_s8 = inlined_call_operand.vmem [shape: f32[2,32,96], index: 8, kind: input, shape index: {}]   ;;  %s5509_s9 = inlined_call_operand.vmem [shape: f32[2,32,32], index: 9, kind: input, shape index: {}]   ;;  %s5510_s10 = inlined_call_operand.hbm [shape: f32[2,1,32], index: 10, kind: input, shape index: {}]   ;;  %s5511_s11 = inlined_call_operand.vmem [shape: f32[2,1,32], index: 11, kind: input, shape index: {}]   ;;  %s5512_s12 = inlined_call_operand.hbm [shape: f32[2,1,32], index: 12, kind: input, shape index: {}]   ;;  %s5513_s13 = inlined_call_operand.vmem [shape: f32[2,32,64], index: 13, kind: input, shape index: {}]   ;;  %s5514_s14 = inlined_call_operand.hbm [shape: f32[2,1,64], index: 14, kind: input, shape index: {}]   ;;  %s5515_s15 = inlined_call_operand.vmem [shape: f32[2,64,32], index: 15, kind: input, shape index: {}]   ;;  %s5516_s16 = inlined_call_operand.hbm [shape: f32[2,1,32], index: 16, kind: input, shape index: {}]   ;;  %s5517_s17 = inlined_call_operand.hbm [shape: f32[2,16,32], index: 17, kind: output, shape index: {}]  }
   0x1   :  { %5520 = sst [smem:[#allocation27_spill]] %s5500_s0 }
   0x2   :  { %5521 = sst [smem:[#allocation28_spill]] %s5501_s1 }
   0x3   :  { %5522 = sst [smem:[#allocation29_spill]] %s5517_s17 }
   0x4   :  { %22 = vsyncpa [#allocation3], 0 }
   0x5   :  { %23 = vsyncpa [#allocation6], 0 }
   0x6   :  { %24 = vsyncpa [#allocation9], 0 }
   0x7   :  { %25 = vsyncpa [#allocation12], 0 }
   0x8   :  { %26 = vsyncpa [#allocation15], 0 }
   0x9   :  { %27 = vsyncpa [#allocation18], 0 }
   0xa   :  { %28 = vsyncpa [#allocation4], 0  ;;  %s4677_s24 = smov [#allocation5]   ;;  %s4421_s28 = scalar_lea.hbm %s5502_s2, 256 }
   0xb   :  { %s48_s25 = sshll.u32 %s4677_s24, 4  ;;  %p4422_p0 = scmp.ne.s32.totalorder %s5502_s2, %s4421_s28  ;;  %s49_s25 = int_to_ptr.vmem [resolvable:$true] %s48_s25 }
   0xc   :  { %p4425_p1 = scmp.lt.u32.totalorder %s4421_s28, %s5502_s2 }
   0xe   :  { %p4427_p2 = pnand %p4425_p1, %p4422_p0 }
  0x10   :  { %4430 = shalt.err (!%p4427_p2)
}
  0x11   :  { %s4431_s19 = scalar_lea.vmem %s49_s25, 256  ;;  %p4436_p4 = scmp.lt.s32.totalorder %s49_s25, %s49_s25 }
  0x12   :  { %p4432_p3 = scmp.ne.s32.totalorder %s49_s25, %s4431_s19  ;;  %p4437_p5 = scmp.lt.s32.totalorder %s4431_s19, %s4431_s19 }
  0x14   :  { %p4438_p6 = por %p4437_p5, %p4436_p4 }
  0x16   :  { %p4439_p7 = pnand %p4438_p6, %p4432_p3 }
  0x18   :  { %4442 = shalt.err (!%p4439_p7)
}
  0x19   :  { %s4678_s1 = smov 128   ;;  %s4679_s20 = smov 8  }
  0x1a   :  { %54 = dma.hbm_to_vmem [thread:$0]  %s5502_s2, 256, %s49_s25, [#allocation6], %s4678_s1, %s4678_s1, %s4679_s20  }
  0x1b   :  { %s4680_s23 = smov [#allocation8]   ;;  %s4681_s26 = smov [#allocation11]  }
  0x1c   :  { %s74_s24 = sshll.u32 %s4680_s23, 4  ;;  %s98_s27 = sshll.u32 %s4681_s26, 4  ;;  %s75_s24 = int_to_ptr.vmem [resolvable:$true] %s74_s24  ;;  %s99_s27 = int_to_ptr.vmem [resolvable:$true] %s98_s27 }
  0x1d   :  { %s4443_s0 = scalar_lea.hbm %s5505_s5, 32 }
  0x1e   :  { %p4444_p8 = scmp.ne.s32.totalorder %s5505_s5, %s4443_s0  ;;  %p4447_p9 = scmp.lt.u32.totalorder %s4443_s0, %s5505_s5 }
  0x20   :  { %p4449_p10 = pnand %p4447_p9, %p4444_p8 }
  0x22   :  { %4452 = shalt.err (!%p4449_p10)
}
  0x23   :  { %s4453_s2 = scalar_lea.vmem %s75_s24, 32  ;;  %p4458_p12 = scmp.lt.s32.totalorder %s75_s24, %s75_s24 }
  0x24   :  { %p4454_p11 = scmp.ne.s32.totalorder %s75_s24, %s4453_s2  ;;  %p4459_p13 = scmp.lt.s32.totalorder %s4453_s2, %s4453_s2 }
  0x26   :  { %p4460_p0 = por %p4459_p13, %p4458_p12 }
  0x28   :  { %p4461_p1 = pnand %p4460_p0, %p4454_p11 }
  0x2a   :  { %4464 = shalt.err (!%p4461_p1)
}
  0x2b   :  { %s4682_s25 = smov 16   ;;  %s4683_s21 = smov 1  }
  0x2c   :  { %80 = dma.hbm_to_vmem [thread:$0]  %s5505_s5, 32, %s75_s24, [#allocation9], %s4682_s25, %s4682_s25, %s4683_s21  }
  0x2d   :  { %s4465_s28 = scalar_lea.hbm %s5507_s7, 32 }
  0x2e   :  { %p4466_p2 = scmp.ne.s32.totalorder %s5507_s7, %s4465_s28  ;;  %p4469_p3 = scmp.lt.u32.totalorder %s4465_s28, %s5507_s7 }
  0x30   :  { %p4471_p4 = pnand %p4469_p3, %p4466_p2 }
  0x32   :  { %4474 = shalt.err (!%p4471_p4)
}
  0x33   :  { %s4475_s19 = scalar_lea.vmem %s99_s27, 32  ;;  %p4480_p6 = scmp.lt.s32.totalorder %s99_s27, %s99_s27 }
  0x34   :  { %p4476_p5 = scmp.ne.s32.totalorder %s99_s27, %s4475_s19  ;;  %p4481_p7 = scmp.lt.s32.totalorder %s4475_s19, %s4475_s19 }
  0x36   :  { %p4482_p8 = por %p4481_p7, %p4480_p6 }
  0x38   :  { %p4483_p9 = pnand %p4482_p8, %p4476_p5 }
  0x3a   :  { %4486 = shalt.err (!%p4483_p9)
}
  0x3b   :  { %104 = dma.hbm_to_vmem [thread:$0]  %s5507_s7, 32, %s99_s27, [#allocation12], %s4682_s25, %s4682_s25, %s4683_s21  }
  0x3c   :  { %s4684_s2 = smov [#allocation14]   ;;  %s4685_s23 = smov [#allocation2]  }
  0x3d   :  { %s128_s22 = sshll.u32 %s4684_s2, 4  ;;  %s34_s17 = sshll.u32 %s4685_s23, 4  ;;  %s129_s22 = int_to_ptr.vmem [resolvable:$true] %s128_s22  ;;  %s35_s17 = int_to_ptr.vmem [resolvable:$true] %s34_s17 }
  0x3e   :  { %s4487_s29 = scalar_lea.hbm %s5512_s12, 32 }
  0x3f   :  { %p4488_p10 = scmp.ne.s32.totalorder %s5512_s12, %s4487_s29  ;;  %p4491_p11 = scmp.lt.u32.totalorder %s4487_s29, %s5512_s12 }
  0x41   :  { %p4493_p12 = pnand %p4491_p11, %p4488_p10 }
  0x43   :  { %4496 = shalt.err (!%p4493_p12)
}
  0x44   :  { %s4497_s7 = scalar_lea.vmem %s129_s22, 32  ;;  %p4502_p0 = scmp.lt.s32.totalorder %s129_s22, %s129_s22 }
  0x45   :  { %p4498_p13 = scmp.ne.s32.totalorder %s129_s22, %s4497_s7  ;;  %p4503_p1 = scmp.lt.s32.totalorder %s4497_s7, %s4497_s7 }
  0x47   :  { %p4504_p2 = por %p4503_p1, %p4502_p0 }
  0x49   :  { %p4505_p3 = pnand %p4504_p2, %p4498_p13 }
  0x4b   :  { %4508 = shalt.err (!%p4505_p3)
}
  0x4c   :  { %134 = dma.hbm_to_vmem [thread:$0]  %s5512_s12, 32, %s129_s22, [#allocation15], %s4682_s25, %s4682_s25, %s4683_s21  }
  0x4d   :  { %s5523_s23 = sld [smem:[#allocation27_spill]] }
  0x53   :  { %s4509_s26 = scalar_lea.hbm %s5523_s23, 512 }
  0x54   :  { %p4510_p4 = scmp.ne.s32.totalorder %s5523_s23, %s4509_s26  ;;  %p4513_p5 = scmp.lt.u32.totalorder %s4509_s26, %s5523_s23 }
  0x56   :  { %p4515_p6 = pnand %p4513_p5, %p4510_p4 }
  0x58   :  { %4518 = shalt.err (!%p4515_p6)
}
  0x59   :  { %s4519_s18 = scalar_lea.vmem %s35_s17, 512  ;;  %p4524_p8 = scmp.lt.s32.totalorder %s35_s17, %s35_s17 }
  0x5a   :  { %p4520_p7 = scmp.ne.s32.totalorder %s35_s17, %s4519_s18  ;;  %p4525_p9 = scmp.lt.s32.totalorder %s4519_s18, %s4519_s18 }
  0x5c   :  { %p4526_p10 = por %p4525_p9, %p4524_p8 }
  0x5e   :  { %p4527_p11 = pnand %p4526_p10, %p4520_p7 }
  0x60   :  { %4530 = shalt.err (!%p4527_p11)
}
  0x61   :  { %40 = dma.hbm_to_vmem [thread:$0]  %s5523_s23, 512, %s35_s17, [#allocation3], %s4678_s1, %s4678_s1, %s4679_s20  }
  0x62   :  { %s4686_s19 = smov [#allocation7]   ;;  %s4687_s27 = smov [#allocation10]  }
  0x63   :  { %s60_s7 = sshll.u32 %s4686_s19, 4  ;;  %s86_s5 = sshll.u32 %s4687_s27, 4  ;;  %s61_s7 = int_to_ptr.vmem [resolvable:$true] %s60_s7  ;;  %s87_s5 = int_to_ptr.vmem [resolvable:$true] %s86_s5 }
  0x64   :  { %s4531_s26 = scalar_lea.hbm %s5503_s3, 32 }
  0x65   :  { %p4532_p12 = scmp.ne.s32.totalorder %s5503_s3, %s4531_s26  ;;  %p4535_p13 = scmp.lt.u32.totalorder %s4531_s26, %s5503_s3 }
  0x67   :  { %p4537_p0 = pnand %p4535_p13, %p4532_p12 }
  0x69   :  { %4540 = shalt.err (!%p4537_p0)
}
  0x6a   :  { %s4541_s17 = scalar_lea.vmem %s61_s7, 32  ;;  %p4546_p2 = scmp.lt.s32.totalorder %s61_s7, %s61_s7 }
  0x6b   :  { %p4542_p1 = scmp.ne.s32.totalorder %s61_s7, %s4541_s17  ;;  %p4547_p3 = scmp.lt.s32.totalorder %s4541_s17, %s4541_s17 }
  0x6d   :  { %p4548_p4 = por %p4547_p3, %p4546_p2 }
  0x6f   :  { %p4549_p5 = pnand %p4548_p4, %p4542_p1 }
  0x71   :  { %4552 = shalt.err (!%p4549_p5)
}
  0x72   :  { %66 = dma.hbm_to_vmem [thread:$0]  %s5503_s3, 32, %s61_s7, [#allocation6], %s4682_s25, %s4682_s25, %s4683_s21  }
  0x73   :  { %s4553_s19 = scalar_lea.hbm %s5506_s6, 32 }
  0x74   :  { %p4554_p6 = scmp.ne.s32.totalorder %s5506_s6, %s4553_s19  ;;  %p4557_p7 = scmp.lt.u32.totalorder %s4553_s19, %s5506_s6 }
  0x76   :  { %p4559_p8 = pnand %p4557_p7, %p4554_p6 }
  0x78   :  { %4562 = shalt.err (!%p4559_p8)
}
  0x79   :  { %s4563_s28 = scalar_lea.vmem %s87_s5, 32  ;;  %p4568_p10 = scmp.lt.s32.totalorder %s87_s5, %s87_s5 }
  0x7a   :  { %p4564_p9 = scmp.ne.s32.totalorder %s87_s5, %s4563_s28  ;;  %p4569_p11 = scmp.lt.s32.totalorder %s4563_s28, %s4563_s28 }
  0x7c   :  { %p4570_p12 = por %p4569_p11, %p4568_p10 }
  0x7e   :  { %p4571_p13 = pnand %p4570_p12, %p4564_p9 }
  0x80   :  { %4574 = shalt.err (!%p4571_p13)
}
  0x81   :  { %92 = dma.hbm_to_vmem [thread:$0]  %s5506_s6, 32, %s87_s5, [#allocation9], %s4682_s25, %s4682_s25, %s4683_s21  }
  0x82   :  { %s4688_s29 = smov [#allocation13]   ;;  %s4689_s30 = smov [#allocation16]  }
  0x83   :  { %s114_s0 = sshll.u32 %s4688_s29, 4  ;;  %s142_s17 = sshll.u32 %s4689_s30, 4  ;;  %s115_s0 = int_to_ptr.vmem [resolvable:$true] %s114_s0  ;;  %s143_s17 = int_to_ptr.vmem [resolvable:$true] %s142_s17 }
  0x84   :  { %s4575_s12 = scalar_lea.hbm %s5510_s10, 32 }
  0x85   :  { %p4576_p0 = scmp.ne.s32.totalorder %s5510_s10, %s4575_s12  ;;  %p4579_p1 = scmp.lt.u32.totalorder %s4575_s12, %s5510_s10 }
  0x87   :  { %p4581_p2 = pnand %p4579_p1, %p4576_p0 }
  0x89   :  { %4584 = shalt.err (!%p4581_p2)
}
  0x8a   :  { %s4585_s6 = scalar_lea.vmem %s115_s0, 32  ;;  %p4590_p4 = scmp.lt.s32.totalorder %s115_s0, %s115_s0 }
  0x8b   :  { %p4586_p3 = scmp.ne.s32.totalorder %s115_s0, %s4585_s6  ;;  %p4591_p5 = scmp.lt.s32.totalorder %s4585_s6, %s4585_s6 }
  0x8d   :  { %p4592_p6 = por %p4591_p5, %p4590_p4 }
  0x8f   :  { %p4593_p7 = pnand %p4592_p6, %p4586_p3 }
  0x91   :  { %4596 = shalt.err (!%p4593_p7)
}
  0x92   :  { %120 = dma.hbm_to_vmem [thread:$0]  %s5510_s10, 32, %s115_s0, [#allocation12], %s4682_s25, %s4682_s25, %s4683_s21  }
  0x93   :  { %s4597_s3 = scalar_lea.hbm %s5514_s14, 32 }
  0x94   :  { %p4598_p8 = scmp.ne.s32.totalorder %s5514_s14, %s4597_s3  ;;  %p4601_p9 = scmp.lt.u32.totalorder %s4597_s3, %s5514_s14 }
  0x96   :  { %p4603_p10 = pnand %p4601_p9, %p4598_p8 }
  0x98   :  { %4606 = shalt.err (!%p4603_p10)
}
  0x99   :  { %s4607_s18 = scalar_lea.vmem %s143_s17, 32  ;;  %p4612_p12 = scmp.lt.s32.totalorder %s143_s17, %s143_s17 }
  0x9a   :  { %p4608_p11 = scmp.ne.s32.totalorder %s143_s17, %s4607_s18  ;;  %p4613_p13 = scmp.lt.s32.totalorder %s4607_s18, %s4607_s18 }
  0x9c   :  { %p4614_p0 = por %p4613_p13, %p4612_p12 }
  0x9e   :  { %p4615_p1 = pnand %p4614_p0, %p4608_p11 }
  0xa0   :  { %4618 = shalt.err (!%p4615_p1)
}
  0xa1   :  { %148 = dma.hbm_to_vmem [thread:$0]  %s5514_s14, 32, %s143_s17, [#allocation15], %s4682_s25, %s4682_s25, %s4683_s21  }
  0xa2   :  { %s4690_s12 = smov [#allocation17]   ;;  %s4619_s24 = scalar_lea.hbm %s5516_s16, 32 }
  0xa3   :  { %s156_s22 = sshll.u32 %s4690_s12, 4  ;;  %p4620_p2 = scmp.ne.s32.totalorder %s5516_s16, %s4619_s24  ;;  %s157_s22 = int_to_ptr.vmem [resolvable:$true] %s156_s22 }
  0xa4   :  { %p4623_p3 = scmp.lt.u32.totalorder %s4619_s24, %s5516_s16 }
  0xa6   :  { %p4625_p4 = pnand %p4623_p3, %p4620_p2 }
  0xa8   :  { %4628 = shalt.err (!%p4625_p4)
}
  0xa9   :  { %s4629_s28 = scalar_lea.vmem %s157_s22, 32  ;;  %p4634_p6 = scmp.lt.s32.totalorder %s157_s22, %s157_s22 }
  0xaa   :  { %p4630_p5 = scmp.ne.s32.totalorder %s157_s22, %s4629_s28  ;;  %p4635_p7 = scmp.lt.s32.totalorder %s4629_s28, %s4629_s28 }
  0xac   :  { %p4636_p8 = por %p4635_p7, %p4634_p6 }
  0xae   :  { %p4637_p9 = pnand %p4636_p8, %p4630_p5 }
  0xb0   :  { %4640 = shalt.err (!%p4637_p9)
}
  0xb1   :  { %162 = dma.hbm_to_vmem [thread:$0]  %s5516_s16, 32, %s157_s22, [#allocation18], %s4682_s25, %s4682_s25, %s4683_s21  }
  0xb2   :  { %4663 = dma.done.wait [#allocation3], 512  }
  0xb3   :  { %4664 = vsyncadd [#allocation3], 4294966784 }
  0xb4   :  { %4665 = dma.done.wait [#allocation6], 288  }
  0xb5   :  { %4666 = vsyncadd [#allocation6], 4294967008 }
  0xb6   :  { %4667 = dma.done.wait [#allocation9], 64  }
  0xb7   :  { %4668 = vsyncadd [#allocation9], 4294967232 }
  0xb8   :  { %4669 = dma.done.wait [#allocation12], 64  }
  0xb9   :  { %4670 = vsyncadd [#allocation12], 4294967232 }
  0xba   :  { %4671 = dma.done.wait [#allocation15], 64  }
  0xbb   :  { %4672 = vsyncadd [#allocation15], 4294967232 }
  0xbc   :  { %4673 = dma.done.wait [#allocation18], 32  }
  0xbd   :  { %4674 = vsyncadd [#allocation18], 4294967264  ;;  %v4691_v0 = vmov 0.0   ;;  %vm4692_vm0 = vmmov 0   ;;  %vm210_vm1 = vcmask 64512   ;;  %v194_v1 = vld [vmem:[#allocation5] sm:$0xff]  ;;  %v531_v19 = vlaneseq }
  0xbe   :  { %3767 = vmatprep.subr.mxu0 %v4691_v0  ;;  %3769 = vmatprep.mubr.msk.f32.mxu0 %vm4692_vm0, %v4691_v0  ;;  %s5524_s3 = sld [smem:[#allocation28_spill]]  ;;  %v356_v3 = vld [vmem:[%s5504_s4] sm:$0xff]  ;;  %v357_v4 = vld [vmem:[%s5504_s4 + $0x8] sm:$0xff]  ;;  %v4693_v5 = vmov 0.0|0.0   ;;  %v3498_v7 = vld [vmem:[#allocation7] ss:$0 sm:$0xff] }
  0xbf   :  { %3772 = vmatprep.subr.mxu1 %v4691_v0  ;;  %3774 = vmatprep.mubr.msk.f32.mxu1 %vm4692_vm0, %v4691_v0  ;;  %v4032_v6 = vpack.c.bf16 %v357_v4, %v356_v3  ;;  %vm374_vm2 = vcmask 130048   ;;  %v195_v12 = vld [vmem:[#allocation5 + $0x8] sm:$0xff]  ;;  %v3502_v13 = vld [vmem:[#allocation8] ss:$0 sm:$0xff]  ;;  %v4694_v17 = vmov 1966171168  }
  0xc0   :  { %3768 = vmatpush3.msra.mxu0 %v194_v1  ;;  %3773 = vmatpush3.msra.mxu1 %v195_v12  ;;  %v529_v18 = vunpack.c.l.s4 %v4694_v17  ;;  %v532_v21 = vshrl.u32 %v531_v19, 7  ;;  %v523_v28 = vld [vmem:[#allocation2] sm:$0xff]  ;;  %vm566_vm3 = vcmask 261120   ;;  %v525_v31 = vld [vmem:[#allocation2 + $0x10] sm:$0xff]  ;;  %v524_v32 = vld [vmem:[#allocation2 + $0x8] sm:$0xff]  ;;  %s4695_s26 = smov 96  }
  0xc1   :  { %4031 = vmatprep.subr.bf16.mxu0 %v4693_v5  ;;  %4034 = vmatprep.subr.bf16.mxu1 %v4693_v5  ;;  %v526_v35 = vld [vmem:[#allocation2 + $0x18] sm:$0xff]  ;;  %v3499_v63 = vld [vmem:[#allocation7 + $0x1] ss:$0 sm:$0xff]  ;;  %vm5042_vm4 = vmpackc.low %vm374_vm2, %vm374_vm2  ;;  %s4696_s28 = smov 64   ;;  %s4697_s14 = smov 80   ;;  %vm1893_vm5 = vcmask 523264  }
  0xc2   :  { %v530_v20 = vunpack.c.0.s8 %v529_v18  ;;  %v4960_v25 = vsub.s32 0, %v532_v21  ;;  %v358_v3 = vld [vmem:[%s5504_s4 + $0x10] sm:$0xff]  ;;  %v359_v4 = vld [vmem:[%s5504_s4 + $0x18] sm:$0xff]  ;;  %s4698_s17 = smov 112   ;;  %s4699_s16 = smov 48  }
  0xc3   :  { %v4035_v5 = vpack.c.bf16 %v359_v4, %v358_v3 }
  0xc4   :  { %v193_v2 = vld [vmem:[%s5524_s3] sm:$0x3]  ;;  %v4957_v22 = vsub.s32 %v530_v20, %v532_v21 }
  0xc5   :  { %3770 = vmatmul.mubr.msk.f32.vlgmr.msra.gmra.mrb[0].mxu0 %vm210_vm1, %v193_v2  ;;  %3775 = vmatmul.mubr.msk.f32.vlgmr.msra.gmra.mrb[0].mxu1 %vm210_vm1, %v193_v2 }
  0xc6   :  { %3781 = vmatprep.mubr.msk.f32.mxu0 %vm4692_vm0, %v4691_v0  ;;  %4033 = vmatpush3.bf16.msra.mxu0 %v4032_v6  ;;  %v639_v6 = vld [vmem:[%s5508_s8] sm:$0xff] }
  0xc7   :  { %3788 = vmatprep.mubr.msk.f32.mxu1 %vm4692_vm0, %v4691_v0  ;;  %4036 = vmatpush3.bf16.msra.mxu1 %v4035_v5 }
 0x198   :  { %v280_v8 = vpop.f32.mrb[0].mxu0  ;;  %v350_v0 = vpop.f32.mrb[0].mxu1 }
 0x199   :  { %v281_v9 = vadd.f32 %v3498_v7, %v280_v8  ;;  %v3771_v10 = vpop.f32.mrb[1].mxu0  ;;  %v351_v1 = vadd.f32 %v3499_v63, %v350_v0  ;;  %v3776_v2 = vpop.f32.mrb[1].mxu1  ;;  %v640_v7 = vld [vmem:[%s5508_s8 + $0x8] sm:$0xff] }
 0x19a   :  { %v641_v10 = vld [vmem:[%s5508_s8 + $0x10] sm:$0xff] }
 0x19b   :  { %4301 = vtanh.f32 %v281_v9  ;;  %v4037_v9 = vpack.c.bf16 %v640_v7, %v639_v6 }
 0x19d   :  { %4038 = vmatprep.subr.bf16.mxu1 %v4037_v9 }
 0x1a5   :  { %v4302_v11 = vpop.eup %4301 }
 0x1a6   :  { %3782 = vmatmul.mubr.msk.f32.vlgmr.msra.gmra.mrb[2].mxu0 %vm374_vm2, %v4302_v11  ;;  %v642_v11 = vld [vmem:[%s5508_s8 + $0x18] sm:$0xff] }
 0x1a7   :  { %v4041_v12 = vpack.c.bf16 %v642_v11, %v641_v10 }
 0x279   :  { %v444_v14 = vpop.f32.mrb[2].mxu0 }
 0x27a   :  { %v445_v15 = vadd.f32 %v3502_v13, %v444_v14  ;;  %v3783_v16 = vpop.f32.mrb[3].mxu0 }
 0x27c   :  { %4303 = vtanh.f32 %v445_v15 }
 0x27d   :  { %4305 = vtanh.f32 %v351_v1 }
 0x286   :  { %v4304_v23 = vpop.eup %4303 }
 0x287   :  { %v534_v24 = vrot.slane %v4304_v23, %v4957_v22  ;;  %v4306_v8 = vpop.eup %4305 }
 0x288   :  { %3789 = vmatmul.mubr.msk.f32.vlgmr.msra.gmra.mrb[2].mxu1 %vm374_vm2, %v4306_v8 }
 0x289   :  { %v542_v26 = vrot.slane %v534_v24, %v4957_v22  ;;  %v535_v27 = vcombine.high %v534_v24, %v534_v24  ;;  %4040 = vmatpush3.bf16.msra.mxu1 %v4037_v9 }
 0x28a   :  { %4042 = vmatprep.subr.bf16.mxu1 %v4041_v12 }
 0x28b   :  { %v553_v29 = vrot.slane %v542_v26, %v4960_v25  ;;  %v549_v30 = vrot.slane %v535_v27, %v4957_v22 }
 0x28d   :  { %v4965_v33 = vadd.f32 %v553_v29, %v523_v28  ;;  %v557_v34 = vrot.slane %v549_v30, %v4960_v25  ;;  %v4972_v38 = vadd.f32 %v553_v29, %v524_v32  ;;  %4044 = vmatpush3.bf16.msra.mxu1 %v4041_v12  ;;  %v3506_v28 = vld [vmem:[#allocation10] ss:$0 sm:$0xff]  ;;  %v3507_v30 = vld [vmem:[#allocation11] ss:$0 sm:$0xff] }
 0x28f   :  { %v567_v36 = vsel %vm566_vm3, %v4965_v33, 0.0  ;;  %v4970_v37 = vadd.f32 %v557_v34, %v525_v31  ;;  %v4976_v40 = vadd.f32 %v557_v34, %v526_v35  ;;  %v570_v41 = vsel %vm566_vm3, %v4972_v38, 0.0 }
 0x290   :  { %568 = vadd.xlane.f32.xlu0 %v567_v36 }
 0x291   :  { %v573_v39 = vsel %vm566_vm3, %v4970_v37, 0.0  ;;  %v576_v42 = vsel %vm566_vm3, %v4976_v40, 0.0 }
 0x292   :  { %574 = vadd.xlane.f32.xlu1 %v573_v39 }
 0x294   :  { %571 = vadd.xlane.f32.xlu0 %v570_v41 }
 0x296   :  { %577 = vadd.xlane.f32.xlu1 %v576_v42 }
 0x31d   :  { %v569_v43 = vpop.xlane.xlu0 %568 }
 0x31e   :  { %v579_v44 = vmul.f32 0.03125, %v569_v43 }
 0x31f   :  { %v575_v45 = vpop.xlane.xlu1 %574 }
 0x320   :  { %v583_v46 = vsub.f32 %v4965_v33, %v579_v44  ;;  %v581_v47 = vmul.f32 0.03125, %v575_v45 }
 0x321   :  { %v572_v48 = vpop.xlane.xlu0 %571 }
 0x322   :  { %v4984_v49 = vsub.f32 %v4970_v37, %v581_v47  ;;  %v580_v50 = vmul.f32 0.03125, %v572_v48  ;;  %v587_v51 = vmul.f32 %v583_v46, %v583_v46 }
 0x323   :  { %v578_v52 = vpop.xlane.xlu1 %577 }
 0x324   :  { %v584_v53 = vsub.f32 %v4972_v38, %v580_v50  ;;  %v582_v54 = vmul.f32 0.03125, %v578_v52  ;;  %v591_v55 = vsel %vm566_vm3, %v587_v51, 0.0  ;;  %v589_v56 = vmul.f32 %v4984_v49, %v4984_v49 }
 0x325   :  { %592 = vadd.xlane.f32.xlu0 %v591_v55 }
 0x326   :  { %v586_v57 = vsub.f32 %v4976_v40, %v582_v54  ;;  %v588_v58 = vmul.f32 %v584_v53, %v584_v53  ;;  %v597_v60 = vsel %vm566_vm3, %v589_v56, 0.0 }
 0x328   :  { %v594_v59 = vsel %vm566_vm3, %v588_v58, 0.0  ;;  %v590_v61 = vmul.f32 %v586_v57, %v586_v57 }
 0x329   :  { %595 = vadd.xlane.f32.xlu1 %v594_v59  ;;  %598 = vadd.xlane.f32.xlu0 %v597_v60 }
 0x32a   :  { %v600_v62 = vsel %vm566_vm3, %v590_v61, 0.0 }
 0x32d   :  { %601 = vadd.xlane.f32.xlu1 %v600_v62 }
 0x35b   :  { %v5018_v50 = vpop.f32.mrb[2].mxu1 }
 0x3b2   :  { %v593_v13 = vpop.xlane.xlu0 %592 }
 0x3b3   :  { %v603_v14 = vmul.f32 0.03125, %v593_v13 }
 0x3b5   :  { %v607_v15 = vadd.f32 1e-05, %v603_v14 }
 0x3b6   :  { %v599_v16 = vpop.xlane.xlu0 %598  ;;  %v596_v17 = vpop.xlane.xlu1 %595 }
 0x3b7   :  { %4307 = vrsqrt.f32 %v607_v15  ;;  %v605_v18 = vmul.f32 0.03125, %v599_v16  ;;  %v604_v19 = vmul.f32 0.03125, %v596_v17 }
 0x3b9   :  { %v609_v20 = vadd.f32 1e-05, %v605_v18  ;;  %v608_v21 = vadd.f32 1e-05, %v604_v19 }
 0x3ba   :  { %v602_v23 = vpop.xlane.xlu1 %601 }
 0x3bb   :  { %4309 = vrsqrt.f32 %v609_v20  ;;  %v606_v24 = vmul.f32 0.03125, %v602_v23 }
 0x3bc   :  { %4311 = vrsqrt.f32 %v608_v21 }
 0x3bd   :  { %v610_v26 = vadd.f32 1e-05, %v606_v24 }
 0x3bf   :  { %4313 = vrsqrt.f32 %v610_v26 }
 0x3c1   :  { %v4308_v27 = vpop.eup %4307 }
 0x3c2   :  { %v615_v29 = vmul.f32 %v4308_v27, %v583_v46 }
 0x3c4   :  { %v625_v31 = vmul.f32 %v3506_v28, %v615_v29 }
 0x3c5   :  { %v4310_v32 = vpop.eup %4309 }
 0x3c6   :  { %v4312_v34 = vpop.eup %4311  ;;  %v635_v35 = vadd.f32 %v3507_v30, %v625_v31  ;;  %v617_v36 = vmul.f32 %v4310_v32, %v4984_v49  ;;  %v3790_v49 = vpop.f32.mrb[3].mxu1 }
 0x3c7   :  { %v616_v39 = vmul.f32 %v4312_v34, %v584_v53 }
 0x3c8   :  { %3799 = vmatprep.mubr.msk.f32.mxu1 %vm566_vm3, %v635_v35  ;;  %v627_v41 = vmul.f32 %v3506_v28, %v617_v36 }
 0x3c9   :  { %v4314_v42 = vpop.eup %4313  ;;  %v626_v43 = vmul.f32 %v3506_v28, %v616_v39 }
 0x3ca   :  { %v637_v44 = vadd.f32 %v3507_v30, %v627_v41  ;;  %v618_v45 = vmul.f32 %v4314_v42, %v586_v57 }
 0x3cb   :  { %v636_v47 = vadd.f32 %v3507_v30, %v626_v43 }
 0x3cc   :  { %v628_v48 = vmul.f32 %v3506_v28, %v618_v45 }
 0x3cd   :  { %3800 = vmatmul.mubr.msk.f32.vlgmr.msra.gmra.mrb[4].mxu1 %vm566_vm3, %v636_v47 }
 0x3ce   :  { %3802 = vmatprep.mubr.msk.f32.mxu1 %vm566_vm3, %v637_v44  ;;  %v638_v46 = vadd.f32 %v3507_v30, %v628_v48 }
 0x3d1   :  { %3803 = vmatmul.mubr.msk.f32.gmra.mrb[6].mxu1 %vm566_vm3, %v638_v46 }
 0x4a0   :  { %v5020_v51 = vpop.f32.mrb[4].mxu1 }
 0x4a1   :  { %v721_v52 = vpop.f32.mrb[5].mxu1 }
 0x4a2   :  { %3809 = vmatprep.mubr.msk.f32.mxu1 %vm374_vm2, %v721_v52  ;;  %v5024_v53 = vpack.i.bf16 %v5020_v51, %v721_v52 }
 0x4a4   :  { %4222 = vrot.lane.b32.xlu0 %v5024_v53, %s4695_s26  ;;  %v5028_v54 = vpop.f32.mrb[6].mxu1 }
 0x4a5   :  { %v5030_v55 = vpop.f32.mrb[7].mxu1 }
 0x4a6   :  { %3816 = vmatprep.mubr.msk.f32.mxu0 %vm374_vm2, %v5030_v55  ;;  %v5036_v56 = vpack.i.bf16 %v5028_v54, %v5030_v55 }
 0x4a8   :  { %4227 = vrot.lane.b32.xlu1 %v5036_v56, %s4695_s26 }
 0x516   :  { %v4223_v57 = vpop.permute.xlu0 %4222 }
 0x517   :  { %v4225_v58 = vunpack.i.h.bf16 %v4223_v57  ;;  %v4224_v59 = vunpack.i.l.bf16 %v4223_v57 }
 0x519   :  { %v4045_v61 = vpack.c.bf16 %v4225_v58, %v4224_v59 }
 0x51a   :  { %v4228_v62 = vpop.permute.xlu1 %4227 }
 0x51b   :  { %v4230_v63 = vunpack.i.h.bf16 %v4228_v62  ;;  %v4229_v0 = vunpack.i.l.bf16 %v4228_v62  ;;  %4047 = vmatprep.subr.msk.bf16.mxu1 %vm5042_vm4, %v4045_v61 }
 0x51c   :  { %4050 = vmatpush3.bf16.xpose.msk.msra.mxu1 %vm5042_vm4, %v4045_v61 }
 0x51d   :  { %v4051_v1 = vpack.c.bf16 %v4230_v63, %v4229_v0 }
 0x51f   :  { %4053 = vmatprep.subr.msk.bf16.mxu0 %vm5042_vm4, %v4051_v1 }
 0x520   :  { %4056 = vmatpush3.bf16.xpose.msk.msra.mxu0 %vm5042_vm4, %v4051_v1 }
 0x523   :  { %3810 = vmatmul.mubr.msk.f32.vlgmr.msra.gmra.mrb[8].mxu1 %vm374_vm2, %v5020_v51 }
 0x527   :  { %3817 = vmatmul.mubr.msk.f32.vlgmr.msra.gmra.mrb[4].mxu0 %vm374_vm2, %v5028_v54 }
 0x5f6   :  { %v3811_v2 = vpop.f32.mrb[8].mxu1 }
 0x5f7   :  { %v919_v3 = vmul.f32 0.25, %v3811_v2  ;;  %v820_v4 = vpop.f32.mrb[9].mxu1 }
 0x5f8   :  { %v918_v5 = vmul.f32 0.25, %v820_v4 }
 0x5f9   :  { %v925_v6 = vsel %vm374_vm2, %v919_v3, -inf }
 0x5fa   :  { %926 = vmax.xlane.f32.xlu0 %v925_v6  ;;  %v3818_v7 = vpop.f32.mrb[4].mxu0  ;;  %v922_v8 = vsel %vm374_vm2, %v918_v5, -inf }
 0x5fb   :  { %v921_v9 = vmul.f32 0.25, %v3818_v7  ;;  %923 = vmax.xlane.f32.xlu1 %v922_v8  ;;  %v909_v10 = vpop.f32.mrb[5].mxu0 }
 0x5fc   :  { %v920_v11 = vmul.f32 0.25, %v909_v10 }
 0x5fd   :  { %v931_v12 = vsel %vm374_vm2, %v921_v9, -inf }
 0x5fe   :  { %v928_v13 = vsel %vm374_vm2, %v920_v11, -inf }
 0x5ff   :  { %932 = vmax.xlane.f32.xlu1 %v931_v12  ;;  %929 = vmax.xlane.f32.xlu0 %v928_v13 }
 0x610   :  { %4237 = vrot.lane.b32.xlu1 %v5036_v56, %s4696_s28 }
 0x614   :  { %4242 = vrot.lane.b32.xlu1 %v5024_v53, %s4697_s14 }
 0x615   :  { %4232 = vrot.lane.b32.xlu0 %v5024_v53, %s4696_s28 }
 0x618   :  { %1140 = vrot.lane.b32.xlu1 %v721_v52, %s4698_s17 }
 0x687   :  { %v927_v14 = vpop.xlane.xlu0 %926 }
 0x688   :  { %v935_v15 = vsub.f32 %v919_v3, %v927_v14  ;;  %v924_v16 = vpop.xlane.xlu1 %923 }
 0x689   :  { %v934_v17 = vsub.f32 %v918_v5, %v924_v16 }
 0x68a   :  { %v940_v18 = vmul.f32 1.442695, %v935_v15 }
 0x68b   :  { %v938_v19 = vmul.f32 1.442695, %v934_v17 }
 0x68c   :  { %4315 = vpow2.f32 %v940_v18  ;;  %v933_v20 = vpop.xlane.xlu1 %932  ;;  %v930_v21 = vpop.xlane.xlu0 %929 }
 0x68d   :  { %4317 = vpow2.f32 %v938_v19  ;;  %v937_v23 = vsub.f32 %v921_v9, %v933_v20  ;;  %v936_v24 = vsub.f32 %v920_v11, %v930_v21 }
 0x68f   :  { %v944_v26 = vmul.f32 1.442695, %v937_v23  ;;  %v942_v27 = vmul.f32 1.442695, %v936_v24 }
 0x690   :  { %v4238_v28 = vpop.permute.xlu1 %4237  ;;  %v4233_v29 = vpop.permute.xlu0 %4232 }
 0x691   :  { %4319 = vpow2.f32 %v944_v26  ;;  %v4235_v30 = vunpack.i.h.bf16 %v4233_v29  ;;  %v4240_v31 = vunpack.i.h.bf16 %v4238_v28  ;;  %v4239_v32 = vunpack.i.l.bf16 %v4238_v28 }
 0x692   :  { %4321 = vpow2.f32 %v942_v27  ;;  %v4234_v34 = vunpack.i.l.bf16 %v4233_v29 }
 0x693   :  { %v4061_v43 = vpack.c.bf16 %v4240_v31, %v4239_v32 }
 0x694   :  { %v4057_v35 = vpack.c.bf16 %v4235_v30, %v4234_v34  ;;  %v4243_v36 = vpop.permute.xlu1 %4242 }
 0x695   :  { %v4245_v39 = vunpack.i.h.bf16 %v4243_v36  ;;  %v4244_v41 = vunpack.i.l.bf16 %v4243_v36 }
 0x696   :  { %v4316_v42 = vpop.eup %4315  ;;  %4058 = vmatprep.subr.bf16.mxu1 %v4057_v35 }
 0x697   :  { %v4318_v44 = vpop.eup %4317  ;;  %v4065_v45 = vpack.c.bf16 %v4245_v39, %v4244_v41  ;;  %4060 = vmatpush3.bf16.msra.mxu1 %v4057_v35  ;;  %v949_v47 = vsel %vm374_vm2, %v4316_v42, 0.0 }
 0x698   :  { %4062 = vmatprep.subr.bf16.mxu1 %v4061_v43  ;;  %950 = vadd.xlane.f32.xlu1 %v949_v47  ;;  %v1141_v48 = vpop.permute.xlu1 %1140  ;;  %v946_v46 = vsel %vm374_vm2, %v4318_v44, 0.0 }
 0x699   :  { %4067 = vmatprep.subr.msk.bf16.mxu0 %vm5042_vm4, %v4065_v45  ;;  %3837 = vmatprep.mubr.msk.f32.mxu0 %vm374_vm2, %v1141_v48 }
 0x69a   :  { %947 = vadd.xlane.f32.xlu0 %v946_v46  ;;  %4070 = vmatpush3.bf16.xpose.msk.msra.mxu0 %vm5042_vm4, %v4065_v45 }
 0x69b   :  { %v4320_v49 = vpop.eup %4319 }
 0x69c   :  { %v4322_v52 = vpop.eup %4321  ;;  %v955_v57 = vsel %vm374_vm2, %v4320_v49, 0.0 }
 0x69d   :  { %956 = vadd.xlane.f32.xlu1 %v955_v57  ;;  %v952_v58 = vsel %vm374_vm2, %v4322_v52, 0.0 }
 0x69e   :  { %953 = vadd.xlane.f32.xlu0 %v952_v58 }
 0x6ae   :  { %1142 = vrot.lane.b32.xlu1 %v5020_v51, %s4698_s17 }
 0x6b2   :  { %1233 = vrot.lane.b32.xlu1 %v5028_v54, %s4698_s17 }
 0x6b4   :  { %4247 = vrot.lane.b32.xlu0 %v5036_v56, %s4697_s14 }
 0x6b8   :  { %1231 = vrot.lane.b32.xlu0 %v5030_v55, %s4698_s17 }
 0x725   :  { %v951_v59 = vpop.xlane.xlu1 %950 }
 0x726   :  { %4323 = vrcp.f32 %v951_v59 }
 0x727   :  { %v948_v61 = vpop.xlane.xlu0 %947 }
 0x728   :  { %4325 = vrcp.f32 %v948_v61 }
 0x72a   :  { %v957_v62 = vpop.xlane.xlu1 %956 }
 0x72b   :  { %4327 = vrcp.f32 %v957_v62  ;;  %v954_v63 = vpop.xlane.xlu0 %953 }
 0x72c   :  { %4329 = vrcp.f32 %v954_v63 }
 0x72e   :  { %v1143_v0 = vpop.permute.xlu1 %1142 }
 0x72f   :  { %v4248_v1 = vpop.permute.xlu0 %4247  ;;  %3838 = vmatmul.mubr.msk.f32.vlgmr.msra.gmra.mrb[6].mxu0 %vm374_vm2, %v1143_v0 }
 0x730   :  { %v4324_v51 = vpop.eup %4323  ;;  %v4250_v2 = vunpack.i.h.bf16 %v4248_v1  ;;  %v4249_v3 = vunpack.i.l.bf16 %v4248_v1 }
 0x731   :  { %v963_v5 = vmul.f32 %v4324_v51, %v4316_v42 }
 0x732   :  { %v4326_v54 = vpop.eup %4325  ;;  %v4071_v8 = vpack.c.bf16 %v4250_v2, %v4249_v3  ;;  %v1234_v11 = vpop.permute.xlu1 %1233 }
 0x733   :  { %v962_v4 = vmul.f32 %v4326_v54, %v4318_v44  ;;  %v1232_v10 = vpop.permute.xlu0 %1231 }
 0x735   :  { %v4328_v6 = vpop.eup %4327  ;;  %3823 = vmatprep.mubr.msk.f32.mxu1 %vm374_vm2, %v962_v4 }
 0x736   :  { %v4330_v55 = vpop.eup %4329  ;;  %v965_v7 = vmul.f32 %v4328_v6, %v4320_v49  ;;  %3824 = vmatmul.mubr.msk.f32.vlgmr.msra.gmra.mrb[10].mxu1 %vm374_vm2, %v963_v5 }
 0x737   :  { %4064 = vmatpush3.bf16.msra.mxu1 %v4061_v43  ;;  %v964_v9 = vmul.f32 %v4330_v55, %v4322_v52 }
 0x738   :  { %4073 = vmatprep.subr.msk.bf16.mxu1 %vm5042_vm4, %v4071_v8 }
 0x739   :  { %3830 = vmatprep.mubr.msk.f32.mxu1 %vm374_vm2, %v964_v9 }
 0x73a   :  { %3831 = vmatmul.mubr.msk.f32.vlgmr.msra.gmra.mrb[12].mxu1 %vm374_vm2, %v965_v7 }
 0x73b   :  { %3844 = vmatprep.mubr.msk.f32.mxu1 %vm374_vm2, %v1232_v10 }
 0x740   :  { %4076 = vmatpush3.bf16.xpose.msk.msra.mxu1 %vm5042_vm4, %v4071_v8 }
 0x747   :  { %3845 = vmatmul.mubr.msk.f32.vlgmr.msra.gmra.mrb[14].mxu1 %vm374_vm2, %v1234_v11 }
 0x802   :  { %v3839_v12 = vpop.f32.mrb[6].mxu0 }
 0x803   :  { %v1323_v13 = vmul.f32 0.25, %v3839_v12  ;;  %v1222_v14 = vpop.f32.mrb[7].mxu0  ;;  %v1564_v12 = vld [vmem:[%s5509_s9] sm:$0xff] }
 0x804   :  { %v1322_v15 = vmul.f32 0.25, %v1222_v14 }
 0x805   :  { %v1329_v16 = vsel %vm374_vm2, %v1323_v13, -inf }
 0x806   :  { %1330 = vmax.xlane.f32.xlu1 %v1329_v16  ;;  %v1326_v17 = vsel %vm374_vm2, %v1322_v15, -inf  ;;  %v1567_v16 = vld [vmem:[%s5509_s9 + $0x18] sm:$0xff] }
 0x807   :  { %1327 = vmax.xlane.f32.xlu0 %v1326_v17 }
 0x809   :  { %v5099_v18 = vpop.f32.mrb[10].mxu1 }
 0x80a   :  { %v5101_v19 = vpop.f32.mrb[11].mxu1 }
 0x80d   :  { %v5103_v20 = vpop.f32.mrb[12].mxu1 }
 0x80e   :  { %v5105_v21 = vpop.f32.mrb[13].mxu1 }
 0x81a   :  { %v3846_v23 = vpop.f32.mrb[14].mxu1 }
 0x81b   :  { %v1313_v24 = vpop.f32.mrb[15].mxu1  ;;  %v1325_v27 = vmul.f32 0.25, %v3846_v23 }
 0x81c   :  { %v1324_v26 = vmul.f32 0.25, %v1313_v24 }
 0x81d   :  { %v1335_v29 = vsel %vm374_vm2, %v1325_v27, -inf }
 0x81e   :  { %v1332_v28 = vsel %vm374_vm2, %v1324_v26, -inf }
 0x81f   :  { %1333 = vmax.xlane.f32.xlu0 %v1332_v28 }
 0x823   :  { %1336 = vmax.xlane.f32.xlu0 %v1335_v29 }
 0x893   :  { %v1331_v30 = vpop.xlane.xlu1 %1330 }
 0x894   :  { %v1339_v31 = vsub.f32 %v1323_v13, %v1331_v30  ;;  %v1328_v32 = vpop.xlane.xlu0 %1327  ;;  %v1565_v13 = vld [vmem:[%s5509_s9 + $0x8] sm:$0xff] }
 0x895   :  { %v1338_v34 = vsub.f32 %v1322_v15, %v1328_v32  ;;  %v4085_v14 = vpack.c.bf16 %v1565_v13, %v1564_v12  ;;  %v1566_v15 = vld [vmem:[%s5509_s9 + $0x10] sm:$0xff] }
 0x896   :  { %v1344_v35 = vmul.f32 1.442695, %v1339_v31  ;;  %v4089_v17 = vpack.c.bf16 %v1567_v16, %v1566_v15 }
 0x897   :  { %v1342_v36 = vmul.f32 1.442695, %v1338_v34 }
 0x898   :  { %4331 = vpow2.f32 %v1344_v35 }
 0x899   :  { %4333 = vpow2.f32 %v1342_v36 }
 0x8a2   :  { %v4332_v39 = vpop.eup %4331 }
 0x8a3   :  { %v4334_v41 = vpop.eup %4333  ;;  %v1353_v42 = vsel %vm374_vm2, %v4332_v39, 0.0 }
 0x8a4   :  { %1354 = vadd.xlane.f32.xlu1 %v1353_v42  ;;  %v1350_v43 = vsel %vm374_vm2, %v4334_v41, 0.0 }
 0x8a5   :  { %1351 = vadd.xlane.f32.xlu0 %v1350_v43 }
 0x8ac   :  { %v1334_v44 = vpop.xlane.xlu0 %1333 }
 0x8ad   :  { %v1340_v45 = vsub.f32 %v1324_v26, %v1334_v44 }
 0x8af   :  { %v1346_v47 = vmul.f32 1.442695, %v1340_v45 }
 0x8b0   :  { %v1337_v48 = vpop.xlane.xlu0 %1336 }
 0x8b1   :  { %4335 = vpow2.f32 %v1346_v47  ;;  %v1341_v46 = vsub.f32 %v1325_v27, %v1337_v48 }
 0x8b3   :  { %v1348_v49 = vmul.f32 1.442695, %v1341_v46 }
 0x8b5   :  { %4337 = vpow2.f32 %v1348_v49 }
 0x8bb   :  { %v4336_v52 = vpop.eup %4335 }
 0x8bc   :  { %v1356_v57 = vsel %vm374_vm2, %v4336_v52, 0.0 }
 0x8bd   :  { %1357 = vadd.xlane.f32.xlu0 %v1356_v57 }
 0x8bf   :  { %v4338_v58 = vpop.eup %4337 }
 0x8c0   :  { %v1359_v59 = vsel %vm374_vm2, %v4338_v58, 0.0 }
 0x8c1   :  { %1360 = vadd.xlane.f32.xlu1 %v1359_v59 }
 0x8d2   :  { %4257 = vrot.lane.b32.xlu1 %v5036_v56, %s4699_s16 }
 0x8d3   :  { %4252 = vrot.lane.b32.xlu0 %v5024_v53, %s4699_s16 }
 0x931   :  { %v1355_v0 = vpop.xlane.xlu1 %1354 }
 0x932   :  { %v1352_v61 = vpop.xlane.xlu0 %1351 }
 0x933   :  { %4339 = vrcp.f32 %v1352_v61 }
 0x934   :  { %4341 = vrcp.f32 %v1355_v0 }
 0x93d   :  { %v4340_v62 = vpop.eup %4339 }
 0x93e   :  { %v1366_v63 = vmul.f32 %v4340_v62, %v4334_v41  ;;  %v4342_v56 = vpop.eup %4341 }
 0x93f   :  { %v1367_v7 = vmul.f32 %v4342_v56, %v4332_v39 }
 0x940   :  { %3851 = vmatprep.mubr.msk.f32.mxu0 %vm374_vm2, %v1366_v63 }
 0x94a   :  { %v1358_v1 = vpop.xlane.xlu0 %1357 }
 0x94b   :  { %4343 = vrcp.f32 %v1358_v1 }
 0x94e   :  { %v1361_v51 = vpop.xlane.xlu1 %1360  ;;  %v4253_v54 = vpop.permute.xlu0 %4252 }
 0x94f   :  { %4345 = vrcp.f32 %v1361_v51  ;;  %v4255_v2 = vunpack.i.h.bf16 %v4253_v54  ;;  %v4254_v3 = vunpack.i.l.bf16 %v4253_v54 }
 0x951   :  { %v4077_v4 = vpack.c.bf16 %v4255_v2, %v4254_v3 }
 0x952   :  { %v4258_v5 = vpop.permute.xlu1 %4257 }
 0x953   :  { %v4260_v6 = vunpack.i.h.bf16 %v4258_v5  ;;  %v4259_v53 = vunpack.i.l.bf16 %v4258_v5  ;;  %4078 = vmatprep.subr.bf16.mxu0 %v4077_v4 }
 0x954   :  { %4080 = vmatpush3.bf16.msra.mxu0 %v4077_v4 }
 0x955   :  { %v4344_v55 = vpop.eup %4343  ;;  %v4081_v8 = vpack.c.bf16 %v4260_v6, %v4259_v53  ;;  %4086 = vmatprep.subr.bf16.mxu0 %v4085_v14 }
 0x956   :  { %v1368_v9 = vmul.f32 %v4344_v55, %v4336_v52 }
 0x957   :  { %3852 = vmatmul.mubr.msk.f32.vlgmr.msra.gmra.mrb[8].mxu0 %vm374_vm2, %v1367_v7  ;;  %4082 = vmatprep.subr.bf16.mxu1 %v4081_v8  ;;  %v1750_v7 = vld [vmem:[%s5513_s13] sm:$0xff] }
 0x958   :  { %4084 = vmatpush3.bf16.msra.mxu1 %v4081_v8  ;;  %3858 = vmatprep.mubr.msk.f32.mxu1 %vm374_vm2, %v1368_v9  ;;  %v1751_v8 = vld [vmem:[%s5513_s13 + $0x8] sm:$0xff] }
 0x959   :  { %v4346_v10 = vpop.eup %4345  ;;  %4088 = vmatpush3.bf16.msra.mxu0 %v4085_v14  ;;  %v4093_v9 = vpack.c.bf16 %v1751_v8, %v1750_v7 }
 0x95a   :  { %v1369_v11 = vmul.f32 %v4346_v10, %v4338_v58  ;;  %4090 = vmatprep.subr.bf16.mxu0 %v4089_v17  ;;  %v1752_v10 = vld [vmem:[%s5513_s13 + $0x10] sm:$0xff] }
 0x95b   :  { %4094 = vmatprep.subr.bf16.mxu1 %v4093_v9 }
 0x95c   :  { %3859 = vmatmul.mubr.msk.f32.vlgmr.msra.gmra.mrb[16].mxu1 %vm374_vm2, %v1369_v11  ;;  %v1753_v11 = vld [vmem:[%s5513_s13 + $0x18] sm:$0xff] }
 0x95d   :  { %4092 = vmatpush3.bf16.msra.mxu0 %v4089_v17  ;;  %4096 = vmatpush3.bf16.msra.mxu1 %v4093_v9  ;;  %v4097_v12 = vpack.c.bf16 %v1753_v11, %v1752_v10 }
 0x95f   :  { %4098 = vmatprep.subr.bf16.mxu1 %v4097_v12 }
 0x961   :  { %4100 = vmatpush3.bf16.msra.mxu1 %v4097_v12 }
 0xa2a   :  { %v3853_v23 = vpop.f32.mrb[8].mxu0 }
 0xa2b   :  { %v1448_v24 = vpop.f32.mrb[9].mxu0 }
 0xa2c   :  { %1548 = vrot.lane.b32.xlu1 %v1448_v24, %s4682_s25 }
 0xa2f   :  { %v3860_v26 = vpop.f32.mrb[16].mxu1 }
 0xa30   :  { %v1535_v27 = vpop.f32.mrb[17].mxu1  ;;  %1550 = vrot.lane.b32.xlu1 %v3853_v23, %s4682_s25 }
 0xa31   :  { %1552 = vrot.lane.b32.xlu0 %v1535_v27, %s4682_s25 }
 0xa34   :  { %1554 = vrot.lane.b32.xlu1 %v3860_v26, %s4682_s25 }
 0xa9e   :  { %v1549_v28 = vpop.permute.xlu1 %1548 }
 0xa9f   :  { %v1560_v29 = vsel %vm374_vm2, %v5101_v19, %v1549_v28  ;;  %v3536_v19 = vld [vmem:[#allocation13] ss:$0 sm:$0xff] }
 0xaa0   :  { %3869 = vmatprep.mubr.msk.f32.mxu0 %vm566_vm3, %v1560_v29 }
 0xaa2   :  { %v1551_v30 = vpop.permute.xlu1 %1550 }
 0xaa3   :  { %v1561_v31 = vsel %vm374_vm2, %v5099_v18, %v1551_v30  ;;  %v1553_v32 = vpop.permute.xlu0 %1552 }
 0xaa4   :  { %v1562_v34 = vsel %vm374_vm2, %v5105_v21, %v1553_v32  ;;  %3870 = vmatmul.mubr.msk.f32.vlgmr.msra.gmra.mrb[10].mxu0 %vm566_vm3, %v1561_v31  ;;  %v3541_v32 = vld [vmem:[%s5511_s11] ss:$0 sm:$0xff] }
 0xaa5   :  { %3872 = vmatprep.mubr.msk.f32.mxu0 %vm566_vm3, %v1562_v34 }
 0xaa6   :  { %v1555_v35 = vpop.permute.xlu1 %1554 }
 0xaa7   :  { %v1563_v36 = vsel %vm374_vm2, %v5103_v20, %v1555_v35 }
 0xaa8   :  { %3873 = vmatmul.mubr.msk.f32.gmra.mrb[12].mxu0 %vm566_vm3, %v1563_v36 }
 0xb77   :  { %v3871_v39 = vpop.f32.mrb[10].mxu0 }
 0xb78   :  { %v1659_v41 = vadd.f32 %v3871_v39, %v3536_v19  ;;  %v1653_v42 = vpop.f32.mrb[11].mxu0 }
 0xb79   :  { %v1654_v43 = vadd.f32 %v3536_v19, %v1653_v42 }
 0xb7a   :  { %v5150_v18 = vadd.f32 %v1659_v41, %v4972_v38 }
 0xb7b   :  { %v5153_v21 = vadd.f32 %v1654_v43, %v4965_v33  ;;  %v3874_v44 = vpop.f32.mrb[12].mxu0 }
 0xb7c   :  { %v1663_v45 = vpop.f32.mrb[13].mxu0  ;;  %v1681_v47 = vsel %vm566_vm3, %v5150_v18, 0.0  ;;  %v1669_v48 = vadd.f32 %v3874_v44, %v3536_v19 }
 0xb7d   :  { %v1664_v20 = vadd.f32 %v3536_v19, %v1663_v45  ;;  %1682 = vadd.xlane.f32.xlu1 %v1681_v47  ;;  %v1678_v46 = vsel %vm566_vm3, %v5153_v21, 0.0  ;;  %v3542_v19 = vld [vmem:[#allocation14] ss:$0 sm:$0xff] }
 0xb7e   :  { %1679 = vadd.xlane.f32.xlu0 %v1678_v46  ;;  %v5163_v38 = vadd.f32 %v1669_v48, %v4976_v40 }
 0xb7f   :  { %v5160_v49 = vadd.f32 %v1664_v20, %v4970_v37 }
 0xb80   :  { %v1687_v52 = vsel %vm566_vm3, %v5163_v38, 0.0 }
 0xb81   :  { %v1684_v33 = vsel %vm566_vm3, %v5160_v49, 0.0 }
 0xb82   :  { %1685 = vadd.xlane.f32.xlu0 %v1684_v33 }
 0xb86   :  { %1688 = vadd.xlane.f32.xlu0 %v1687_v52 }
 0xc0a   :  { %v1683_v57 = vpop.xlane.xlu1 %1682 }
 0xc0b   :  { %v1691_v58 = vmul.f32 0.03125, %v1683_v57  ;;  %v1680_v59 = vpop.xlane.xlu0 %1679  ;;  %v1878_v57 = vld [vmem:[%s5515_s15] sm:$0xff] }
 0xc0c   :  { %v1690_v61 = vmul.f32 0.03125, %v1680_v59 }
 0xc0d   :  { %v1695_v62 = vsub.f32 %v5150_v18, %v1691_v58  ;;  %v1879_v58 = vld [vmem:[%s5515_s15 + $0x8] sm:$0xff] }
 0xc0e   :  { %v1694_v37 = vsub.f32 %v5153_v21, %v1690_v61  ;;  %v4101_v59 = vpack.c.bf16 %v1879_v58, %v1878_v57  ;;  %v1880_v61 = vld [vmem:[%s5515_s15 + $0x10] sm:$0xff] }
 0xc0f   :  { %v1686_v63 = vpop.xlane.xlu0 %1685  ;;  %v1699_v0 = vmul.f32 %v1695_v62, %v1695_v62 }
 0xc10   :  { %v1692_v40 = vmul.f32 0.03125, %v1686_v63  ;;  %v1698_v1 = vmul.f32 %v1694_v37, %v1694_v37  ;;  %4102 = vmatprep.subr.bf16.mxu0 %v4101_v59  ;;  %v1882_v63 = vld [vmem:[%s5515_s15 + $0x20] sm:$0xff] }
 0xc11   :  { %v1705_v51 = vsel %vm566_vm3, %v1699_v0, 0.0  ;;  %4104 = vmatpush3.bf16.msra.mxu0 %v4101_v59  ;;  %v1883_v0 = vld [vmem:[%s5515_s15 + $0x28] sm:$0xff] }
 0xc12   :  { %v1696_v54 = vsub.f32 %v5160_v49, %v1692_v40  ;;  %1706 = vadd.xlane.f32.xlu1 %v1705_v51  ;;  %v1702_v2 = vsel %vm566_vm3, %v1698_v1, 0.0  ;;  %v4109_v40 = vpack.c.bf16 %v1883_v0, %v1882_v63  ;;  %v1884_v1 = vld [vmem:[%s5515_s15 + $0x30] sm:$0xff]  ;;  %v1885_v51 = vld [vmem:[%s5515_s15 + $0x38] sm:$0xff] }
 0xc13   :  { %1703 = vadd.xlane.f32.xlu0 %v1702_v2  ;;  %v1689_v3 = vpop.xlane.xlu0 %1688  ;;  %v3543_v2 = vld [vmem:[#allocation16] ss:$0 sm:$0xff] }
 0xc14   :  { %v1693_v4 = vmul.f32 0.03125, %v1689_v3  ;;  %v1700_v56 = vmul.f32 %v1696_v54, %v1696_v54 }
 0xc16   :  { %v1697_v5 = vsub.f32 %v5163_v38, %v1693_v4  ;;  %v1708_v6 = vsel %vm566_vm3, %v1700_v56, 0.0 }
 0xc17   :  { %1709 = vadd.xlane.f32.xlu0 %v1708_v6 }
 0xc18   :  { %v1701_v53 = vmul.f32 %v1697_v5, %v1697_v5 }
 0xc1a   :  { %v1711_v55 = vsel %vm566_vm3, %v1701_v53, 0.0 }
 0xc1b   :  { %1712 = vadd.xlane.f32.xlu1 %v1711_v55 }
 0xc9f   :  { %v1707_v13 = vpop.xlane.xlu1 %1706 }
 0xca0   :  { %v1715_v14 = vmul.f32 0.03125, %v1707_v13  ;;  %v1704_v15 = vpop.xlane.xlu0 %1703 }
 0xca1   :  { %v1714_v16 = vmul.f32 0.03125, %v1704_v15 }
 0xca2   :  { %v1719_v17 = vadd.f32 1e-05, %v1715_v14 }
 0xca3   :  { %v1718_v23 = vadd.f32 1e-05, %v1714_v16 }
 0xca4   :  { %4347 = vrsqrt.f32 %v1719_v17  ;;  %v1710_v24 = vpop.xlane.xlu0 %1709 }
 0xca5   :  { %4349 = vrsqrt.f32 %v1718_v23  ;;  %v1716_v26 = vmul.f32 0.03125, %v1710_v24 }
 0xca7   :  { %v1720_v27 = vadd.f32 1e-05, %v1716_v26 }
 0xca8   :  { %v1713_v28 = vpop.xlane.xlu1 %1712 }
 0xca9   :  { %4351 = vrsqrt.f32 %v1720_v27  ;;  %v1717_v29 = vmul.f32 0.03125, %v1713_v28 }
 0xcab   :  { %v1721_v30 = vadd.f32 1e-05, %v1717_v29 }
 0xcad   :  { %4353 = vrsqrt.f32 %v1721_v30 }
 0xcae   :  { %v4348_v31 = vpop.eup %4347 }
 0xcaf   :  { %v4350_v34 = vpop.eup %4349  ;;  %v1727_v35 = vmul.f32 %v4348_v31, %v1695_v62  ;;  %v1881_v62 = vld [vmem:[%s5515_s15 + $0x18] sm:$0xff] }
 0xcb0   :  { %v1726_v36 = vmul.f32 %v4350_v34, %v1694_v37  ;;  %v4105_v37 = vpack.c.bf16 %v1881_v62, %v1880_v61 }
 0xcb1   :  { %v1737_v39 = vmul.f32 %v3541_v32, %v1727_v35  ;;  %v3503_v35 = vld [vmem:[#allocation8 + $0x1] ss:$0 sm:$0xff] }
 0xcb2   :  { %v1736_v41 = vmul.f32 %v3541_v32, %v1726_v36  ;;  %4106 = vmatprep.subr.bf16.mxu0 %v4105_v37  ;;  %v518_v36 = vadd.f32 %v3503_v35, %v5018_v50 }
 0xcb3   :  { %v4352_v42 = vpop.eup %4351  ;;  %v1747_v45 = vadd.f32 %v3542_v19, %v1737_v39  ;;  %4108 = vmatpush3.bf16.msra.mxu0 %v4105_v37 }
 0xcb4   :  { %v1746_v43 = vadd.f32 %v3542_v19, %v1736_v41  ;;  %v1728_v44 = vmul.f32 %v4352_v42, %v1696_v54  ;;  %4110 = vmatprep.subr.bf16.mxu0 %v4109_v40  ;;  %v4113_v54 = vpack.c.bf16 %v1885_v51, %v1884_v1  ;;  %v3548_v41 = vld [vmem:[#allocation17] ss:$0 sm:$0xff] }
 0xcb6   :  { %3883 = vmatprep.mubr.msk.f32.mxu1 %vm566_vm3, %v1746_v43  ;;  %v1738_v47 = vmul.f32 %v3541_v32, %v1728_v44 }
 0xcb7   :  { %v4354_v48 = vpop.eup %4353  ;;  %3884 = vmatmul.mubr.msk.f32.vlgmr.msra.gmra.mrb[18].mxu1 %vm566_vm3, %v1747_v45  ;;  %4112 = vmatpush3.bf16.msra.mxu0 %v4109_v40 }
 0xcb8   :  { %v1748_v20 = vadd.f32 %v3542_v19, %v1738_v47  ;;  %v1729_v46 = vmul.f32 %v4354_v48, %v1697_v5  ;;  %4114 = vmatprep.subr.bf16.mxu0 %v4113_v54 }
 0xcba   :  { %3886 = vmatprep.mubr.msk.f32.mxu1 %vm566_vm3, %v1748_v20  ;;  %v1739_v33 = vmul.f32 %v3541_v32, %v1729_v46 }
 0xcbb   :  { %4116 = vmatpush3.bf16.msra.mxu0 %v4113_v54 }
 0xcbc   :  { %v1749_v52 = vadd.f32 %v3542_v19, %v1739_v33 }
 0xcbe   :  { %3887 = vmatmul.mubr.msk.f32.gmra.mrb[20].mxu1 %vm566_vm3, %v1749_v52 }
 0xd8a   :  { %v3885_v3 = vpop.f32.mrb[18].mxu1 }
 0xd8b   :  { %v1845_v4 = vadd.f32 %v3885_v3, %v3543_v2  ;;  %v1839_v56 = vpop.f32.mrb[19].mxu1 }
 0xd8c   :  { %v1840_v5 = vadd.f32 %v3543_v2, %v1839_v56 }
 0xd8d   :  { %v1863_v6 = vmul.f32 0.70710677, %v1845_v4  ;;  %v1859_v17 = vmul.f32 0.5, %v1845_v4 }
 0xd8e   :  { %v1862_v53 = vmul.f32 0.70710677, %v1840_v5  ;;  %v1858_v15 = vmul.f32 0.5, %v1840_v5 }
 0xd8f   :  { %4355 = verf.f32 %v1863_v6 }
 0xd90   :  { %4357 = verf.f32 %v1862_v53 }
 0xd91   :  { %v3888_v55 = vpop.f32.mrb[20].mxu1 }
 0xd92   :  { %v1855_v7 = vadd.f32 %v3888_v55, %v3543_v2  ;;  %v1849_v8 = vpop.f32.mrb[21].mxu1 }
 0xd93   :  { %v1850_v9 = vadd.f32 %v3543_v2, %v1849_v8 }
 0xd94   :  { %v1865_v10 = vmul.f32 0.70710677, %v1855_v7  ;;  %v1861_v31 = vmul.f32 0.5, %v1855_v7 }
 0xd95   :  { %v1864_v11 = vmul.f32 0.70710677, %v1850_v9  ;;  %v1860_v29 = vmul.f32 0.5, %v1850_v9 }
 0xd96   :  { %4359 = verf.f32 %v1865_v10 }
 0xd97   :  { %4361 = verf.f32 %v1864_v11 }
 0xd98   :  { %4363 = vtanh.f32 %v518_v36 }
 0xd99   :  { %v4356_v12 = vpop.eup %4355 }
 0xd9a   :  { %v4358_v13 = vpop.eup %4357  ;;  %v1871_v14 = vadd.f32 1.0, %v4356_v12 }
 0xd9b   :  { %v1870_v16 = vadd.f32 1.0, %v4358_v13 }
 0xd9c   :  { %v1875_v24 = vmul.f32 %v1871_v14, %v1859_v17 }
 0xd9d   :  { %v1874_v23 = vmul.f32 %v1870_v16, %v1858_v15  ;;  %v3555_v15 = vld [vmem:[%s5508_s8 + $0x20] sm:$0xff]  ;;  %v3556_v16 = vld [vmem:[%s5508_s8 + $0x28] sm:$0xff] }
 0xd9e   :  { %v4117_v17 = vpack.c.bf16 %v3556_v16, %v3555_v15 }
 0xd9f   :  { %3905 = vmatprep.mubr.msk.f32.mxu0 %vm1893_vm5, %v1874_v23  ;;  %v3557_v23 = vld [vmem:[%s5508_s8 + $0x30] sm:$0xff] }
 0xda0   :  { %v4360_v26 = vpop.eup %4359  ;;  %3906 = vmatmul.mubr.msk.f32.vlgmr.msra.gmra.mrb[14].mxu0 %vm1893_vm5, %v1875_v24  ;;  %4118 = vmatprep.subr.bf16.mxu1 %v4117_v17  ;;  %v3558_v24 = vld [vmem:[%s5508_s8 + $0x38] sm:$0xff] }
 0xda1   :  { %v4362_v27 = vpop.eup %4361  ;;  %v1873_v28 = vadd.f32 1.0, %v4360_v26  ;;  %4120 = vmatpush3.bf16.msra.mxu1 %v4117_v17  ;;  %v4121_v26 = vpack.c.bf16 %v3558_v24, %v3557_v23 }
 0xda2   :  { %v1872_v30 = vadd.f32 1.0, %v4362_v27  ;;  %v4364_v19 = vpop.eup %4363 }
 0xda3   :  { %v1877_v34 = vmul.f32 %v1873_v28, %v1861_v31  ;;  %v2002_v39 = vrot.slane %v4364_v19, %v4957_v22  ;;  %4122 = vmatprep.subr.bf16.mxu1 %v4121_v26 }
 0xda4   :  { %v1876_v32 = vmul.f32 %v1872_v30, %v1860_v29 }
 0xda5   :  { %v2010_v42 = vrot.slane %v2002_v39, %v4957_v22  ;;  %v2003_v48 = vcombine.high %v2002_v39, %v2002_v39  ;;  %4124 = vmatpush3.bf16.msra.mxu1 %v4121_v26 }
 0xda6   :  { %3908 = vmatprep.mubr.msk.f32.mxu0 %vm1893_vm5, %v1876_v32 }
 0xda7   :  { %3909 = vmatmul.mubr.msk.f32.gmra.mrb[16].mxu0 %vm1893_vm5, %v1877_v34  ;;  %v2021_v46 = vrot.slane %v2010_v42, %v4960_v25  ;;  %v2017_v57 = vrot.slane %v2003_v48, %v4957_v22  ;;  %v3554_v48 = vld [vmem:[#allocation11 + $0x1] ss:$0 sm:$0xff] }
 0xda9   :  { %v2025_v63 = vrot.slane %v2017_v57, %v4960_v25 }
 0xe73   :  { %v3907_v43 = vpop.f32.mrb[14].mxu0 }
 0xe74   :  { %v1978_v44 = vadd.f32 %v3907_v43, %v3548_v41  ;;  %v1972_v45 = vpop.f32.mrb[15].mxu0  ;;  %v3553_v43 = vld [vmem:[#allocation10 + $0x1] ss:$0 sm:$0xff] }
 0xe75   :  { %v1973_v47 = vadd.f32 %v3548_v41, %v1972_v45 }
 0xe76   :  { %v1992_v20 = vadd.f32 %v1978_v44, %v5150_v18 }
 0xe77   :  { %v1991_v33 = vadd.f32 %v1973_v47, %v5153_v21 }
 0xe78   :  { %v5230_v52 = vadd.f32 %v2021_v46, %v1992_v20 }
 0xe79   :  { %v5232_v50 = vadd.f32 %v2021_v46, %v1991_v33 }
 0xe7a   :  { %v3910_v58 = vpop.f32.mrb[16].mxu0  ;;  %v2039_v59 = vsel %vm566_vm3, %v5230_v52, 0.0 }
 0xe7b   :  { %v1988_v61 = vadd.f32 %v3910_v58, %v3548_v41  ;;  %2040 = vadd.xlane.f32.xlu1 %v2039_v59  ;;  %v1982_v62 = vpop.f32.mrb[17].mxu0  ;;  %v2036_v18 = vsel %vm566_vm3, %v5232_v50, 0.0 }
 0xe7c   :  { %v1983_v37 = vadd.f32 %v3548_v41, %v1982_v62  ;;  %2037 = vadd.xlane.f32.xlu0 %v2036_v18 }
 0xe7d   :  { %v1994_v21 = vadd.f32 %v1988_v61, %v5163_v38 }
 0xe7e   :  { %v1993_v0 = vadd.f32 %v1983_v37, %v5160_v49 }
 0xe7f   :  { %v5242_v40 = vadd.f32 %v2025_v63, %v1994_v21 }
 0xe80   :  { %v5244_v22 = vadd.f32 %v2025_v63, %v1993_v0 }
 0xe81   :  { %v2045_v1 = vsel %vm566_vm3, %v5242_v40, 0.0 }
 0xe82   :  { %2046 = vadd.xlane.f32.xlu1 %v2045_v1  ;;  %v2042_v51 = vsel %vm566_vm3, %v5244_v22, 0.0 }
 0xe83   :  { %2043 = vadd.xlane.f32.xlu0 %v2042_v51 }
 0xf08   :  { %v2041_v54 = vpop.xlane.xlu1 %2040 }
 0xf09   :  { %v2049_v2 = vmul.f32 0.03125, %v2041_v54  ;;  %v2038_v3 = vpop.xlane.xlu0 %2037 }
 0xf0a   :  { %v2048_v38 = vmul.f32 0.03125, %v2038_v3 }
 0xf0b   :  { %v2053_v25 = vsub.f32 %v5230_v52, %v2049_v2 }
 0xf0c   :  { %v2052_v49 = vsub.f32 %v5232_v50, %v2048_v38 }
 0xf0d   :  { %v2057_v4 = vmul.f32 %v2053_v25, %v2053_v25 }
 0xf0e   :  { %v2056_v56 = vmul.f32 %v2052_v49, %v2052_v49 }
 0xf0f   :  { %v2047_v5 = vpop.xlane.xlu1 %2046  ;;  %v2063_v6 = vsel %vm566_vm3, %v2057_v4, 0.0 }
 0xf10   :  { %v2051_v53 = vmul.f32 0.03125, %v2047_v5  ;;  %v2044_v55 = vpop.xlane.xlu0 %2043  ;;  %2064 = vadd.xlane.f32.xlu1 %v2063_v6  ;;  %v2060_v7 = vsel %vm566_vm3, %v2056_v56, 0.0 }
 0xf11   :  { %v2050_v8 = vmul.f32 0.03125, %v2044_v55  ;;  %2061 = vadd.xlane.f32.xlu0 %v2060_v7 }
 0xf12   :  { %v2055_v9 = vsub.f32 %v5242_v40, %v2051_v53 }
 0xf13   :  { %v2054_v10 = vsub.f32 %v5244_v22, %v2050_v8 }
 0xf14   :  { %v2059_v11 = vmul.f32 %v2055_v9, %v2055_v9 }
 0xf15   :  { %v2058_v12 = vmul.f32 %v2054_v10, %v2054_v10 }
 0xf16   :  { %v2069_v13 = vsel %vm566_vm3, %v2059_v11, 0.0 }
 0xf17   :  { %2070 = vadd.xlane.f32.xlu1 %v2069_v13  ;;  %v2066_v14 = vsel %vm566_vm3, %v2058_v12, 0.0 }
 0xf18   :  { %2067 = vadd.xlane.f32.xlu0 %v2066_v14 }
 0xf9d   :  { %v2065_v27 = vpop.xlane.xlu1 %2064 }
 0xf9e   :  { %v2073_v28 = vmul.f32 0.03125, %v2065_v27  ;;  %v2062_v29 = vpop.xlane.xlu0 %2061 }
 0xf9f   :  { %v2072_v30 = vmul.f32 0.03125, %v2062_v29 }
 0xfa0   :  { %v2077_v31 = vadd.f32 1e-05, %v2073_v28 }
 0xfa1   :  { %v2076_v32 = vadd.f32 1e-05, %v2072_v30 }
 0xfa2   :  { %4365 = vrsqrt.f32 %v2077_v31 }
 0xfa3   :  { %4367 = vrsqrt.f32 %v2076_v32 }
 0xfa4   :  { %v2071_v34 = vpop.xlane.xlu1 %2070 }
 0xfa5   :  { %v2075_v35 = vmul.f32 0.03125, %v2071_v34  ;;  %v2068_v36 = vpop.xlane.xlu0 %2067 }
 0xfa6   :  { %v2074_v19 = vmul.f32 0.03125, %v2068_v36 }
 0xfa7   :  { %v2079_v39 = vadd.f32 1e-05, %v2075_v35 }
 0xfa8   :  { %v2078_v41 = vadd.f32 1e-05, %v2074_v19 }
 0xfa9   :  { %4369 = vrsqrt.f32 %v2079_v39 }
 0xfaa   :  { %4371 = vrsqrt.f32 %v2078_v41 }
 0xfac   :  { %v4366_v42 = vpop.eup %4365 }
 0xfad   :  { %v4368_v44 = vpop.eup %4367  ;;  %v2085_v45 = vmul.f32 %v4366_v42, %v2053_v25 }
 0xfae   :  { %v2084_v47 = vmul.f32 %v4368_v44, %v2052_v49 }
 0xfaf   :  { %v2095_v20 = vmul.f32 %v3553_v43, %v2085_v45 }
 0xfb0   :  { %v2094_v46 = vmul.f32 %v3553_v43, %v2084_v47 }
 0xfb1   :  { %v2105_v58 = vadd.f32 %v3554_v48, %v2095_v20 }
 0xfb2   :  { %v2104_v33 = vadd.f32 %v3554_v48, %v2094_v46 }
 0xfb3   :  { %v4370_v57 = vpop.eup %4369 }
 0xfb4   :  { %v4372_v59 = vpop.eup %4371  ;;  %3919 = vmatprep.mubr.msk.f32.mxu1 %vm566_vm3, %v2104_v33  ;;  %v2087_v61 = vmul.f32 %v4370_v57, %v2055_v9 }
 0xfb5   :  { %3920 = vmatmul.mubr.msk.f32.vlgmr.msra.gmra.mrb[22].mxu1 %vm566_vm3, %v2105_v58  ;;  %v2086_v62 = vmul.f32 %v4372_v59, %v2054_v10 }
 0xfb6   :  { %v2097_v18 = vmul.f32 %v3553_v43, %v2087_v61 }
 0xfb7   :  { %v2096_v37 = vmul.f32 %v3553_v43, %v2086_v62 }
 0xfb8   :  { %v2107_v63 = vadd.f32 %v3554_v48, %v2097_v18 }
 0xfb9   :  { %v2106_v21 = vadd.f32 %v3554_v48, %v2096_v37 }
 0xfbb   :  { %3922 = vmatprep.mubr.msk.f32.mxu1 %vm566_vm3, %v2106_v21 }
 0xfbc   :  { %3923 = vmatmul.mubr.msk.f32.gmra.mrb[24].mxu1 %vm566_vm3, %v2107_v63 }
0x1088   :  { %v5274_v0 = vpop.f32.mrb[22].mxu1 }
0x1089   :  { %v5276_v1 = vpop.f32.mrb[23].mxu1 }
0x108a   :  { %3929 = vmatprep.mubr.msk.f32.mxu1 %vm374_vm2, %v5276_v1  ;;  %v5282_v51 = vpack.i.bf16 %v5274_v0, %v5276_v1 }
0x108c   :  { %4262 = vrot.lane.b32.xlu0 %v5282_v51, %s4695_s26 }
0x108f   :  { %v5286_v54 = vpop.f32.mrb[24].mxu1 }
0x1090   :  { %v5288_v2 = vpop.f32.mrb[25].mxu1 }
0x1091   :  { %3936 = vmatprep.mubr.msk.f32.mxu0 %vm374_vm2, %v5288_v2  ;;  %v5294_v3 = vpack.i.bf16 %v5286_v54, %v5288_v2 }
0x1093   :  { %4267 = vrot.lane.b32.xlu1 %v5294_v3, %s4695_s26 }
0x10fe   :  { %v4263_v38 = vpop.permute.xlu0 %4262 }
0x10ff   :  { %v4265_v25 = vunpack.i.h.bf16 %v4263_v38  ;;  %v4264_v49 = vunpack.i.l.bf16 %v4263_v38 }
0x1101   :  { %v4125_v4 = vpack.c.bf16 %v4265_v25, %v4264_v49 }
0x1103   :  { %4127 = vmatprep.subr.msk.bf16.mxu1 %vm5042_vm4, %v4125_v4 }
0x1104   :  { %4130 = vmatpush3.bf16.xpose.msk.msra.mxu1 %vm5042_vm4, %v4125_v4 }
0x1105   :  { %v4268_v56 = vpop.permute.xlu1 %4267 }
0x1106   :  { %v4270_v5 = vunpack.i.h.bf16 %v4268_v56  ;;  %v4269_v6 = vunpack.i.l.bf16 %v4268_v56 }
0x1108   :  { %v4131_v53 = vpack.c.bf16 %v4270_v5, %v4269_v6 }
0x110a   :  { %4133 = vmatprep.subr.msk.bf16.mxu0 %vm5042_vm4, %v4131_v53 }
0x110b   :  { %3930 = vmatmul.mubr.msk.f32.vlgmr.msra.gmra.mrb[26].mxu1 %vm374_vm2, %v5274_v0  ;;  %4136 = vmatpush3.bf16.xpose.msk.msra.mxu0 %vm5042_vm4, %v4131_v53 }
0x1112   :  { %3937 = vmatmul.mubr.msk.f32.vlgmr.msra.gmra.mrb[18].mxu0 %vm374_vm2, %v5286_v54 }
0x11de   :  { %v3931_v55 = vpop.f32.mrb[26].mxu1 }
0x11df   :  { %v2389_v7 = vmul.f32 0.25, %v3931_v55  ;;  %v2290_v8 = vpop.f32.mrb[27].mxu1 }
0x11e0   :  { %v2388_v9 = vmul.f32 0.25, %v2290_v8 }
0x11e1   :  { %v2395_v10 = vsel %vm374_vm2, %v2389_v7, -inf }
0x11e2   :  { %2396 = vmax.xlane.f32.xlu0 %v2395_v10  ;;  %v2392_v11 = vsel %vm374_vm2, %v2388_v9, -inf }
0x11e3   :  { %2393 = vmax.xlane.f32.xlu1 %v2392_v11 }
0x11e5   :  { %v3938_v12 = vpop.f32.mrb[18].mxu0 }
0x11e6   :  { %v2391_v13 = vmul.f32 0.25, %v3938_v12  ;;  %v2379_v14 = vpop.f32.mrb[19].mxu0 }
0x11e7   :  { %v2390_v15 = vmul.f32 0.25, %v2379_v14 }
0x11e8   :  { %v2401_v16 = vsel %vm374_vm2, %v2391_v13, -inf }
0x11e9   :  { %2402 = vmax.xlane.f32.xlu1 %v2401_v16  ;;  %v2398_v17 = vsel %vm374_vm2, %v2390_v15, -inf }
0x11ea   :  { %2399 = vmax.xlane.f32.xlu0 %v2398_v17 }
0x126f   :  { %v2397_v23 = vpop.xlane.xlu0 %2396 }
0x1270   :  { %v2405_v24 = vsub.f32 %v2389_v7, %v2397_v23  ;;  %v2394_v26 = vpop.xlane.xlu1 %2393 }
0x1271   :  { %v2404_v27 = vsub.f32 %v2388_v9, %v2394_v26 }
0x1272   :  { %v2410_v28 = vmul.f32 1.442695, %v2405_v24 }
0x1273   :  { %v2408_v29 = vmul.f32 1.442695, %v2404_v27 }
0x1274   :  { %4373 = vpow2.f32 %v2410_v28 }
0x1275   :  { %4375 = vpow2.f32 %v2408_v29 }
0x1276   :  { %v2403_v19 = vpop.xlane.xlu1 %2402 }
0x1277   :  { %v2400_v35 = vpop.xlane.xlu0 %2399  ;;  %v2407_v41 = vsub.f32 %v2391_v13, %v2403_v19 }
0x1278   :  { %v2406_v36 = vsub.f32 %v2390_v15, %v2400_v35 }
0x1279   :  { %v2414_v42 = vmul.f32 1.442695, %v2407_v41 }
0x127a   :  { %v2412_v39 = vmul.f32 1.442695, %v2406_v36 }
0x127c   :  { %4377 = vpow2.f32 %v2412_v39 }
0x127d   :  { %4379 = vpow2.f32 %v2414_v42 }
0x127e   :  { %v4374_v30 = vpop.eup %4373 }
0x127f   :  { %v4376_v31 = vpop.eup %4375  ;;  %v2419_v32 = vsel %vm374_vm2, %v4374_v30, 0.0 }
0x1280   :  { %2420 = vadd.xlane.f32.xlu1 %v2419_v32  ;;  %v2416_v34 = vsel %vm374_vm2, %v4376_v31, 0.0 }
0x1281   :  { %2417 = vadd.xlane.f32.xlu0 %v2416_v34 }
0x1286   :  { %v4378_v43 = vpop.eup %4377 }
0x1287   :  { %v2422_v44 = vsel %vm374_vm2, %v4378_v43, 0.0  ;;  %v4380_v45 = vpop.eup %4379 }
0x1288   :  { %v2425_v47 = vsel %vm374_vm2, %v4380_v45, 0.0 }
0x1291   :  { %4277 = vrot.lane.b32.xlu1 %v5294_v3, %s4696_s28 }
0x1295   :  { %4282 = vrot.lane.b32.xlu1 %v5282_v51, %s4697_s14 }
0x1297   :  { %4272 = vrot.lane.b32.xlu0 %v5282_v51, %s4696_s28 }
0x1299   :  { %4287 = vrot.lane.b32.xlu1 %v5294_v3, %s4697_s14 }
0x12b6   :  { %2423 = vadd.xlane.f32.xlu0 %v2422_v44 }
0x12bd   :  { %2426 = vadd.xlane.f32.xlu1 %v2425_v47 }
0x12cc   :  { %2610 = vrot.lane.b32.xlu0 %v5276_v1, %s4698_s17 }
0x12ce   :  { %2612 = vrot.lane.b32.xlu1 %v5274_v0, %s4698_s17 }
0x12d0   :  { %2701 = vrot.lane.b32.xlu0 %v5288_v2, %s4698_s17 }
0x12d2   :  { %2703 = vrot.lane.b32.xlu1 %v5286_v54, %s4698_s17 }
0x130d   :  { %v2421_v48 = vpop.xlane.xlu1 %2420 }
0x130e   :  { %4381 = vrcp.f32 %v2421_v48  ;;  %v2418_v20 = vpop.xlane.xlu0 %2417 }
0x130f   :  { %4383 = vrcp.f32 %v2418_v20 }
0x1311   :  { %v4278_v46 = vpop.permute.xlu1 %4277 }
0x1312   :  { %v4273_v33 = vpop.permute.xlu0 %4272  ;;  %v4280_v57 = vunpack.i.h.bf16 %v4278_v46  ;;  %v4279_v58 = vunpack.i.l.bf16 %v4278_v46 }
0x1313   :  { %v4275_v59 = vunpack.i.h.bf16 %v4273_v33  ;;  %v4274_v61 = vunpack.i.l.bf16 %v4273_v33 }
0x1314   :  { %v4141_v63 = vpack.c.bf16 %v4280_v57, %v4279_v58 }
0x1315   :  { %v4137_v62 = vpack.c.bf16 %v4275_v59, %v4274_v61  ;;  %v4283_v18 = vpop.permute.xlu1 %4282 }
0x1316   :  { %v4285_v37 = vunpack.i.h.bf16 %v4283_v18  ;;  %v4284_v21 = vunpack.i.l.bf16 %v4283_v18 }
0x1317   :  { %4138 = vmatprep.subr.bf16.mxu1 %v4137_v62 }
0x1318   :  { %v4382_v0 = vpop.eup %4381  ;;  %v4145_v1 = vpack.c.bf16 %v4285_v37, %v4284_v21  ;;  %4140 = vmatpush3.bf16.msra.mxu1 %v4137_v62 }
0x1319   :  { %v4384_v54 = vpop.eup %4383  ;;  %v4288_v2 = vpop.permute.xlu1 %4287  ;;  %4142 = vmatprep.subr.bf16.mxu1 %v4141_v63  ;;  %v2433_v4 = vmul.f32 %v4382_v0, %v4374_v30 }
0x131a   :  { %v4290_v38 = vunpack.i.h.bf16 %v4288_v2  ;;  %v4289_v25 = vunpack.i.l.bf16 %v4288_v2  ;;  %4147 = vmatprep.subr.msk.bf16.mxu0 %vm5042_vm4, %v4145_v1  ;;  %v2432_v49 = vmul.f32 %v4384_v54, %v4376_v31 }
0x131b   :  { %4150 = vmatpush3.bf16.xpose.msk.msra.mxu0 %vm5042_vm4, %v4145_v1 }
0x131c   :  { %v4151_v56 = vpack.c.bf16 %v4290_v38, %v4289_v25  ;;  %3943 = vmatprep.mubr.msk.f32.mxu1 %vm374_vm2, %v2432_v49 }
0x131d   :  { %3944 = vmatmul.mubr.msk.f32.vlgmr.msra.gmra.mrb[28].mxu1 %vm374_vm2, %v2433_v4 }
0x131e   :  { %4144 = vmatpush3.bf16.msra.mxu1 %v4141_v63 }
0x131f   :  { %4153 = vmatprep.subr.msk.bf16.mxu1 %vm5042_vm4, %v4151_v56 }
0x1343   :  { %v2424_v5 = vpop.xlane.xlu0 %2423 }
0x1344   :  { %4385 = vrcp.f32 %v2424_v5 }
0x1347   :  { %v2611_v6 = vpop.permute.xlu0 %2610 }
0x1348   :  { %3957 = vmatprep.mubr.msk.f32.mxu0 %vm374_vm2, %v2611_v6 }
0x134a   :  { %v2427_v53 = vpop.xlane.xlu1 %2426 }
0x134b   :  { %4387 = vrcp.f32 %v2427_v53  ;;  %v2702_v11 = vpop.permute.xlu0 %2701 }
0x134e   :  { %v4386_v55 = vpop.eup %4385  ;;  %v2613_v7 = vpop.permute.xlu1 %2612 }
0x134f   :  { %3958 = vmatmul.mubr.msk.f32.vlgmr.msra.gmra.mrb[20].mxu0 %vm374_vm2, %v2613_v7  ;;  %v2434_v8 = vmul.f32 %v4386_v55, %v4378_v43 }
0x1351   :  { %3950 = vmatprep.mubr.msk.f32.mxu1 %vm374_vm2, %v2434_v8 }
0x1352   :  { %v2704_v12 = vpop.permute.xlu1 %2703 }
0x1355   :  { %v4388_v9 = vpop.eup %4387 }
0x1356   :  { %v2435_v10 = vmul.f32 %v4388_v9, %v4380_v45  ;;  %v3587_v9 = vld [vmem:[%s5509_s9 + $0x20] sm:$0xff] }
0x1358   :  { %3951 = vmatmul.mubr.msk.f32.vlgmr.msra.gmra.mrb[30].mxu1 %vm374_vm2, %v2435_v10  ;;  %v3588_v10 = vld [vmem:[%s5509_s9 + $0x28] sm:$0xff] }
0x1359   :  { %4156 = vmatpush3.bf16.xpose.msk.msra.mxu1 %vm5042_vm4, %v4151_v56  ;;  %3964 = vmatprep.mubr.msk.f32.mxu1 %vm374_vm2, %v2702_v11  ;;  %v4165_v11 = vpack.c.bf16 %v3588_v10, %v3587_v9 }
0x1360   :  { %3965 = vmatmul.mubr.msk.f32.vlgmr.msra.gmra.mrb[32].mxu1 %vm374_vm2, %v2704_v12  ;;  %v3589_v12 = vld [vmem:[%s5509_s9 + $0x30] sm:$0xff] }
0x13f0   :  { %v5350_v13 = vpop.f32.mrb[28].mxu1 }
0x13f1   :  { %v5352_v14 = vpop.f32.mrb[29].mxu1 }
0x1422   :  { %v3959_v15 = vpop.f32.mrb[20].mxu0 }
0x1423   :  { %v2793_v16 = vmul.f32 0.25, %v3959_v15  ;;  %v2692_v17 = vpop.f32.mrb[21].mxu0  ;;  %v3590_v15 = vld [vmem:[%s5509_s9 + $0x38] sm:$0xff] }
0x1424   :  { %v2792_v23 = vmul.f32 0.25, %v2692_v17 }
0x1425   :  { %v2799_v24 = vsel %vm374_vm2, %v2793_v16, -inf }
0x1426   :  { %2800 = vmax.xlane.f32.xlu1 %v2799_v24  ;;  %v2796_v26 = vsel %vm374_vm2, %v2792_v23, -inf }
0x1427   :  { %2797 = vmax.xlane.f32.xlu0 %v2796_v26 }
0x142b   :  { %v5356_v60 = vpop.f32.mrb[30].mxu1 }
0x142c   :  { %v5358_v27 = vpop.f32.mrb[31].mxu1 }
0x1433   :  { %v3966_v28 = vpop.f32.mrb[32].mxu1 }
0x1434   :  { %v2783_v29 = vpop.f32.mrb[33].mxu1  ;;  %v2795_v31 = vmul.f32 0.25, %v3966_v28 }
0x1435   :  { %v2794_v30 = vmul.f32 0.25, %v2783_v29 }
0x1436   :  { %v2805_v34 = vsel %vm374_vm2, %v2795_v31, -inf }
0x1437   :  { %v2802_v32 = vsel %vm374_vm2, %v2794_v30, -inf }
0x1438   :  { %2803 = vmax.xlane.f32.xlu0 %v2802_v32 }
0x143c   :  { %2806 = vmax.xlane.f32.xlu0 %v2805_v34 }
0x14b3   :  { %v2801_v35 = vpop.xlane.xlu1 %2800 }
0x14b4   :  { %v2809_v36 = vsub.f32 %v2793_v16, %v2801_v35  ;;  %v2798_v19 = vpop.xlane.xlu0 %2797  ;;  %v4169_v16 = vpack.c.bf16 %v3590_v15, %v3589_v12 }
0x14b5   :  { %v2808_v39 = vsub.f32 %v2792_v23, %v2798_v19 }
0x14b6   :  { %v2814_v41 = vmul.f32 1.442695, %v2809_v36 }
0x14b7   :  { %v2812_v42 = vmul.f32 1.442695, %v2808_v39 }
0x14b8   :  { %4389 = vpow2.f32 %v2814_v41 }
0x14b9   :  { %4391 = vpow2.f32 %v2812_v42 }
0x14c2   :  { %v4390_v43 = vpop.eup %4389 }
0x14c3   :  { %v4392_v44 = vpop.eup %4391  ;;  %v2823_v45 = vsel %vm374_vm2, %v4390_v43, 0.0 }
0x14c4   :  { %2824 = vadd.xlane.f32.xlu1 %v2823_v45  ;;  %v2820_v47 = vsel %vm374_vm2, %v4392_v44, 0.0 }
0x14c5   :  { %v2804_v48 = vpop.xlane.xlu0 %2803  ;;  %2821 = vadd.xlane.f32.xlu0 %v2820_v47 }
0x14c6   :  { %v2810_v20 = vsub.f32 %v2794_v30, %v2804_v48 }
0x14c8   :  { %v2816_v46 = vmul.f32 1.442695, %v2810_v20 }
0x14c9   :  { %v2807_v33 = vpop.xlane.xlu0 %2806 }
0x14ca   :  { %4393 = vpow2.f32 %v2816_v46  ;;  %v2811_v57 = vsub.f32 %v2795_v31, %v2807_v33 }
0x14cc   :  { %v2818_v58 = vmul.f32 1.442695, %v2811_v57 }
0x14ce   :  { %4395 = vpow2.f32 %v2818_v58 }
0x14d4   :  { %v4394_v59 = vpop.eup %4393 }
0x14d5   :  { %v2826_v61 = vsel %vm374_vm2, %v4394_v59, 0.0 }
0x14d6   :  { %2827 = vadd.xlane.f32.xlu0 %v2826_v61 }
0x14d8   :  { %v4396_v62 = vpop.eup %4395 }
0x14d9   :  { %v2829_v18 = vsel %vm374_vm2, %v4396_v62, 0.0 }
0x14da   :  { %2830 = vadd.xlane.f32.xlu1 %v2829_v18 }
0x14eb   :  { %4297 = vrot.lane.b32.xlu1 %v5294_v3, %s4699_s16 }
0x14ec   :  { %4292 = vrot.lane.b32.xlu0 %v5282_v51, %s4699_s16 }
0x1551   :  { %v2825_v63 = vpop.xlane.xlu1 %2824 }
0x1552   :  { %v2822_v37 = vpop.xlane.xlu0 %2821 }
0x1553   :  { %4397 = vrcp.f32 %v2822_v37 }
0x1554   :  { %4399 = vrcp.f32 %v2825_v63 }
0x155d   :  { %v4398_v21 = vpop.eup %4397 }
0x155e   :  { %v2836_v0 = vmul.f32 %v4398_v21, %v4392_v44  ;;  %v4400_v3 = vpop.eup %4399 }
0x155f   :  { %v2837_v6 = vmul.f32 %v4400_v3, %v4390_v43 }
0x1560   :  { %3971 = vmatprep.mubr.msk.f32.mxu0 %vm374_vm2, %v2836_v0 }
0x1563   :  { %v2828_v1 = vpop.xlane.xlu0 %2827 }
0x1564   :  { %4401 = vrcp.f32 %v2828_v1 }
0x1567   :  { %v2831_v54 = vpop.xlane.xlu1 %2830  ;;  %v4293_v2 = vpop.permute.xlu0 %4292 }
0x1568   :  { %4403 = vrcp.f32 %v2831_v54  ;;  %v4295_v38 = vunpack.i.h.bf16 %v4293_v2  ;;  %v4294_v25 = vunpack.i.l.bf16 %v4293_v2 }
0x156a   :  { %v4157_v49 = vpack.c.bf16 %v4295_v38, %v4294_v25 }
0x156b   :  { %v4298_v4 = vpop.permute.xlu1 %4297 }
0x156c   :  { %v4300_v56 = vunpack.i.h.bf16 %v4298_v4  ;;  %v4299_v51 = vunpack.i.l.bf16 %v4298_v4  ;;  %4158 = vmatprep.subr.bf16.mxu0 %v4157_v49  ;;  %v3599_v4 = vld [vmem:[%s5513_s13 + $0x20] sm:$0xff] }
0x156d   :  { %4160 = vmatpush3.bf16.msra.mxu0 %v4157_v49 }
0x156e   :  { %v4402_v5 = vpop.eup %4401  ;;  %v4161_v53 = vpack.c.bf16 %v4300_v56, %v4299_v51  ;;  %4166 = vmatprep.subr.bf16.mxu0 %v4165_v11  ;;  %v3600_v56 = vld [vmem:[%s5513_s13 + $0x28] sm:$0xff] }
0x156f   :  { %v2838_v55 = vmul.f32 %v4402_v5, %v4394_v59  ;;  %v4173_v51 = vpack.c.bf16 %v3600_v56, %v3599_v4  ;;  %v3601_v5 = vld [vmem:[%s5513_s13 + $0x30] sm:$0xff] }
0x1570   :  { %3972 = vmatmul.mubr.msk.f32.vlgmr.msra.gmra.mrb[22].mxu0 %vm374_vm2, %v2837_v6  ;;  %4162 = vmatprep.subr.bf16.mxu1 %v4161_v53  ;;  %v3602_v6 = vld [vmem:[%s5513_s13 + $0x38] sm:$0xff] }
0x1571   :  { %4164 = vmatpush3.bf16.msra.mxu1 %v4161_v53  ;;  %3978 = vmatprep.mubr.msk.f32.mxu1 %vm374_vm2, %v2838_v55  ;;  %v4177_v53 = vpack.c.bf16 %v3602_v6, %v3601_v5 }
0x1572   :  { %v4404_v7 = vpop.eup %4403  ;;  %4168 = vmatpush3.bf16.msra.mxu0 %v4165_v11  ;;  %4174 = vmatprep.subr.bf16.mxu1 %v4173_v51 }
0x1573   :  { %v2839_v8 = vmul.f32 %v4404_v7, %v4396_v62  ;;  %4170 = vmatprep.subr.bf16.mxu0 %v4169_v16 }
0x1575   :  { %3979 = vmatmul.mubr.msk.f32.vlgmr.msra.gmra.mrb[34].mxu1 %vm374_vm2, %v2839_v8 }
0x1576   :  { %4172 = vmatpush3.bf16.msra.mxu0 %v4169_v16  ;;  %4176 = vmatpush3.bf16.msra.mxu1 %v4173_v51 }
0x1577   :  { %4178 = vmatprep.subr.bf16.mxu1 %v4177_v53 }
0x157a   :  { %4180 = vmatpush3.bf16.msra.mxu1 %v4177_v53 }
0x1643   :  { %v3973_v17 = vpop.f32.mrb[22].mxu0 }
0x1644   :  { %v2918_v23 = vpop.f32.mrb[23].mxu0 }
0x1645   :  { %3018 = vrot.lane.b32.xlu1 %v2918_v23, %s4682_s25 }
0x1648   :  { %v3980_v24 = vpop.f32.mrb[34].mxu1 }
0x1649   :  { %v3005_v26 = vpop.f32.mrb[35].mxu1  ;;  %3020 = vrot.lane.b32.xlu1 %v3973_v17, %s4682_s25 }
0x164a   :  { %3022 = vrot.lane.b32.xlu0 %v3005_v26, %s4682_s25 }
0x164d   :  { %3024 = vrot.lane.b32.xlu1 %v3980_v24, %s4682_s25 }
0x16b7   :  { %v3019_v28 = vpop.permute.xlu1 %3018 }
0x16b8   :  { %v3030_v29 = vsel %vm374_vm2, %v5352_v14, %v3019_v28  ;;  %v3591_v14 = vld [vmem:[#allocation13 + $0x1] ss:$0 sm:$0xff]  ;;  %v3597_v28 = vld [vmem:[%s5511_s11 + $0x1] ss:$0 sm:$0xff] }
0x16b9   :  { %3989 = vmatprep.mubr.msk.f32.mxu0 %vm566_vm3, %v3030_v29 }
0x16bb   :  { %v3021_v30 = vpop.permute.xlu1 %3020 }
0x16bc   :  { %v3031_v31 = vsel %vm374_vm2, %v5350_v13, %v3021_v30  ;;  %v3023_v32 = vpop.permute.xlu0 %3022 }
0x16bd   :  { %v3032_v34 = vsel %vm374_vm2, %v5358_v27, %v3023_v32  ;;  %3990 = vmatmul.mubr.msk.f32.vlgmr.msra.gmra.mrb[24].mxu0 %vm566_vm3, %v3031_v31  ;;  %v3598_v32 = vld [vmem:[#allocation14 + $0x1] ss:$0 sm:$0xff] }
0x16be   :  { %3992 = vmatprep.mubr.msk.f32.mxu0 %vm566_vm3, %v3032_v34 }
0x16bf   :  { %v3025_v35 = vpop.permute.xlu1 %3024 }
0x16c0   :  { %v3033_v36 = vsel %vm374_vm2, %v5356_v60, %v3025_v35 }
0x16c1   :  { %3993 = vmatmul.mubr.msk.f32.gmra.mrb[26].mxu0 %vm566_vm3, %v3033_v36 }
0x1790   :  { %v3991_v19 = vpop.f32.mrb[24].mxu0 }
0x1791   :  { %v3131_v39 = vadd.f32 %v3991_v19, %v3591_v14  ;;  %v3125_v41 = vpop.f32.mrb[25].mxu0 }
0x1792   :  { %v3126_v42 = vadd.f32 %v3591_v14, %v3125_v41 }
0x1793   :  { %v5403_v13 = vadd.f32 %v3131_v39, %v5230_v52 }
0x1794   :  { %v5406_v27 = vadd.f32 %v3126_v42, %v5232_v50  ;;  %v3994_v43 = vpop.f32.mrb[26].mxu0 }
0x1795   :  { %v3135_v44 = vpop.f32.mrb[27].mxu0  ;;  %v3155_v45 = vsel %vm566_vm3, %v5403_v13, 0.0  ;;  %v3141_v47 = vadd.f32 %v3994_v43, %v3591_v14 }
0x1796   :  { %v3136_v60 = vadd.f32 %v3591_v14, %v3135_v44  ;;  %3156 = vadd.xlane.f32.xlu1 %v3155_v45  ;;  %v3152_v48 = vsel %vm566_vm3, %v5406_v27, 0.0 }
0x1797   :  { %3153 = vadd.xlane.f32.xlu0 %v3152_v48  ;;  %v5416_v52 = vadd.f32 %v3141_v47, %v5242_v40  ;;  %v3609_v48 = vld [vmem:[%s5515_s15 + $0x48] sm:$0xff] }
0x1798   :  { %v5413_v20 = vadd.f32 %v3136_v60, %v5244_v22  ;;  %v3608_v60 = vld [vmem:[%s5515_s15 + $0x40] sm:$0xff] }
0x1799   :  { %v3161_v46 = vsel %vm566_vm3, %v5416_v52, 0.0 }
0x179a   :  { %v3158_v50 = vsel %vm566_vm3, %v5413_v20, 0.0 }
0x179b   :  { %3159 = vadd.xlane.f32.xlu0 %v3158_v50  ;;  %v4181_v50 = vpack.c.bf16 %v3609_v48, %v3608_v60 }
0x179d   :  { %4182 = vmatprep.subr.bf16.mxu0 %v4181_v50 }
0x179e   :  { %4184 = vmatpush3.bf16.msra.mxu0 %v4181_v50 }
0x179f   :  { %3162 = vadd.xlane.f32.xlu0 %v3161_v46  ;;  %v3610_v46 = vld [vmem:[%s5515_s15 + $0x50] sm:$0xff] }
0x1823   :  { %v3157_v33 = vpop.xlane.xlu1 %3156 }
0x1824   :  { %v3165_v57 = vmul.f32 0.03125, %v3157_v33  ;;  %v3154_v58 = vpop.xlane.xlu0 %3153  ;;  %v3611_v33 = vld [vmem:[%s5515_s15 + $0x58] sm:$0xff] }
0x1825   :  { %v3164_v59 = vmul.f32 0.03125, %v3154_v58  ;;  %v3612_v58 = vld [vmem:[%s5515_s15 + $0x60] sm:$0xff] }
0x1826   :  { %v3169_v61 = vsub.f32 %v5403_v13, %v3165_v57  ;;  %v4185_v57 = vpack.c.bf16 %v3611_v33, %v3610_v46 }
0x1827   :  { %v3168_v22 = vsub.f32 %v5406_v27, %v3164_v59  ;;  %v3613_v59 = vld [vmem:[%s5515_s15 + $0x68] sm:$0xff] }
0x1828   :  { %v3160_v62 = vpop.xlane.xlu0 %3159  ;;  %v3173_v18 = vmul.f32 %v3169_v61, %v3169_v61  ;;  %4186 = vmatprep.subr.bf16.mxu0 %v4185_v57 }
0x1829   :  { %v3166_v40 = vmul.f32 0.03125, %v3160_v62  ;;  %v3172_v37 = vmul.f32 %v3168_v22, %v3168_v22  ;;  %4188 = vmatpush3.bf16.msra.mxu0 %v4185_v57  ;;  %v3615_v62 = vld [vmem:[%s5515_s15 + $0x78] sm:$0xff] }
0x182a   :  { %v3179_v21 = vsel %vm566_vm3, %v3173_v18, 0.0 }
0x182b   :  { %v3170_v63 = vsub.f32 %v5413_v20, %v3166_v40  ;;  %3180 = vadd.xlane.f32.xlu1 %v3179_v21  ;;  %v3176_v0 = vsel %vm566_vm3, %v3172_v37, 0.0  ;;  %v3603_v40 = vld [vmem:[#allocation16 + $0x1] ss:$0 sm:$0xff] }
0x182c   :  { %3177 = vadd.xlane.f32.xlu0 %v3176_v0  ;;  %v3163_v1 = vpop.xlane.xlu0 %3162 }
0x182d   :  { %v3167_v54 = vmul.f32 0.03125, %v3163_v1  ;;  %v3174_v2 = vmul.f32 %v3170_v63, %v3170_v63 }
0x182f   :  { %v3171_v38 = vsub.f32 %v5416_v52, %v3167_v54  ;;  %v3182_v25 = vsel %vm566_vm3, %v3174_v2, 0.0 }
0x1830   :  { %3183 = vadd.xlane.f32.xlu0 %v3182_v25 }
0x1831   :  { %v3175_v49 = vmul.f32 %v3171_v38, %v3171_v38 }
0x1833   :  { %v3185_v3 = vsel %vm566_vm3, %v3175_v49, 0.0 }
0x1834   :  { %3186 = vadd.xlane.f32.xlu1 %v3185_v3 }
0x18b8   :  { %v3181_v55 = vpop.xlane.xlu1 %3180 }
0x18b9   :  { %v3189_v7 = vmul.f32 0.03125, %v3181_v55  ;;  %v3178_v8 = vpop.xlane.xlu0 %3177 }
0x18ba   :  { %v3188_v9 = vmul.f32 0.03125, %v3178_v8 }
0x18bb   :  { %v3193_v10 = vadd.f32 1e-05, %v3189_v7 }
0x18bc   :  { %v3192_v11 = vadd.f32 1e-05, %v3188_v9 }
0x18bd   :  { %4405 = vrsqrt.f32 %v3193_v10  ;;  %v3184_v12 = vpop.xlane.xlu0 %3183 }
0x18be   :  { %4407 = vrsqrt.f32 %v3192_v11  ;;  %v3190_v15 = vmul.f32 0.03125, %v3184_v12 }
0x18c0   :  { %v3194_v16 = vadd.f32 1e-05, %v3190_v15 }
0x18c1   :  { %v3187_v17 = vpop.xlane.xlu1 %3186 }
0x18c2   :  { %4409 = vrsqrt.f32 %v3194_v16  ;;  %v3191_v23 = vmul.f32 0.03125, %v3187_v17 }
0x18c4   :  { %v3195_v24 = vadd.f32 1e-05, %v3191_v23 }
0x18c6   :  { %4411 = vrsqrt.f32 %v3195_v24  ;;  %v3616_v24 = vld [vmem:[#allocation17 + $0x1] ss:$0 sm:$0xff] }
0x18c7   :  { %v4406_v26 = vpop.eup %4405 }
0x18c8   :  { %v4408_v29 = vpop.eup %4407  ;;  %v3201_v30 = vmul.f32 %v4406_v26, %v3169_v61  ;;  %v4189_v61 = vpack.c.bf16 %v3613_v59, %v3612_v58 }
0x18c9   :  { %v3200_v31 = vmul.f32 %v4408_v29, %v3168_v22  ;;  %v3614_v22 = vld [vmem:[%s5515_s15 + $0x70] sm:$0xff]  ;;  %s4700_s15 = smov [#allocation19]  }
0x18ca   :  { %v3211_v34 = vmul.f32 %v3597_v28, %v3201_v30  ;;  %4190 = vmatprep.subr.bf16.mxu0 %v4189_v61  ;;  %v4193_v18 = vpack.c.bf16 %v3615_v62, %v3614_v22  ;;  %s3481_s18 = sshll.u32 %s4700_s15, 4  ;;  %s3482_s18 = int_to_ptr.vmem [resolvable:$true] %s3481_s18 }
0x18cb   :  { %v3210_v35 = vmul.f32 %v3597_v28, %v3200_v31  ;;  %4192 = vmatpush3.bf16.msra.mxu0 %v4189_v61  ;;  %s4641_s10 = scalar_lea.vmem %s3482_s18, 512  ;;  %p4646_p11 = scmp.lt.s32.totalorder %s3482_s18, %s3482_s18 }
0x18cc   :  { %v4410_v36 = vpop.eup %4409  ;;  %v3221_v39 = vadd.f32 %v3598_v32, %v3211_v34  ;;  %4194 = vmatprep.subr.bf16.mxu0 %v4193_v18  ;;  %p4642_p10 = scmp.ne.s32.totalorder %s3482_s18, %s4641_s10  ;;  %p4647_p12 = scmp.lt.s32.totalorder %s4641_s10, %s4641_s10 }
0x18cd   :  { %v3220_v14 = vadd.f32 %v3598_v32, %v3210_v35  ;;  %v3202_v19 = vmul.f32 %v4410_v36, %v3170_v63 }
0x18ce   :  { %p4648_p13 = por %p4647_p12, %p4646_p11 }
0x18cf   :  { %4003 = vmatprep.mubr.msk.f32.mxu1 %vm566_vm3, %v3220_v14  ;;  %v3212_v41 = vmul.f32 %v3597_v28, %v3202_v19  ;;  %4196 = vmatpush3.bf16.msra.mxu0 %v4193_v18 }
0x18d0   :  { %v4412_v42 = vpop.eup %4411  ;;  %4004 = vmatmul.mubr.msk.f32.vlgmr.msra.gmra.mrb[36].mxu1 %vm566_vm3, %v3221_v39  ;;  %p4649_p0 = pnand %p4648_p13, %p4642_p10 }
0x18d1   :  { %v3222_v43 = vadd.f32 %v3598_v32, %v3212_v41  ;;  %v3203_v44 = vmul.f32 %v4412_v42, %v3171_v38 }
0x18d3   :  { %4006 = vmatprep.mubr.msk.f32.mxu1 %vm566_vm3, %v3222_v43  ;;  %v3213_v45 = vmul.f32 %v3597_v28, %v3203_v44 }
0x18d5   :  { %v3223_v47 = vadd.f32 %v3598_v32, %v3213_v45 }
0x18d7   :  { %4007 = vmatmul.mubr.msk.f32.gmra.mrb[38].mxu1 %vm566_vm3, %v3223_v47 }
0x19a3   :  { %v4005_v37 = vpop.f32.mrb[36].mxu1 }
0x19a4   :  { %v3321_v21 = vadd.f32 %v4005_v37, %v3603_v40  ;;  %v3315_v63 = vpop.f32.mrb[37].mxu1 }
0x19a5   :  { %v3316_v0 = vadd.f32 %v3603_v40, %v3315_v63 }
0x19a6   :  { %v3339_v1 = vmul.f32 0.70710677, %v3321_v21  ;;  %v3335_v55 = vmul.f32 0.5, %v3321_v21 }
0x19a7   :  { %v3338_v54 = vmul.f32 0.70710677, %v3316_v0  ;;  %v3334_v6 = vmul.f32 0.5, %v3316_v0 }
0x19a8   :  { %4413 = verf.f32 %v3339_v1 }
0x19a9   :  { %4415 = verf.f32 %v3338_v54 }
0x19aa   :  { %v4008_v2 = vpop.f32.mrb[38].mxu1 }
0x19ab   :  { %v3331_v38 = vadd.f32 %v4008_v2, %v3603_v40  ;;  %v3325_v25 = vpop.f32.mrb[39].mxu1 }
0x19ac   :  { %v3326_v49 = vadd.f32 %v3603_v40, %v3325_v25 }
0x19ad   :  { %v3341_v3 = vmul.f32 0.70710677, %v3331_v38  ;;  %v3337_v16 = vmul.f32 0.5, %v3331_v38 }
0x19ae   :  { %v3340_v4 = vmul.f32 0.70710677, %v3326_v49  ;;  %v3336_v12 = vmul.f32 0.5, %v3326_v49 }
0x19af   :  { %4417 = verf.f32 %v3341_v3 }
0x19b0   :  { %4419 = verf.f32 %v3340_v4 }
0x19b2   :  { %v4414_v56 = vpop.eup %4413 }
0x19b3   :  { %v4416_v51 = vpop.eup %4415  ;;  %v3347_v5 = vadd.f32 1.0, %v4414_v56 }
0x19b4   :  { %v3346_v53 = vadd.f32 1.0, %v4416_v51 }
0x19b5   :  { %v3351_v8 = vmul.f32 %v3347_v5, %v3335_v55 }
0x19b6   :  { %v3350_v7 = vmul.f32 %v3346_v53, %v3334_v6 }
0x19b8   :  { %4025 = vmatprep.mubr.msk.f32.mxu0 %vm1893_vm5, %v3350_v7 }
0x19b9   :  { %v4418_v9 = vpop.eup %4417  ;;  %4026 = vmatmul.mubr.msk.f32.vlgmr.msra.gmra.mrb[28].mxu0 %vm1893_vm5, %v3351_v8 }
0x19ba   :  { %v4420_v10 = vpop.eup %4419  ;;  %v3349_v11 = vadd.f32 1.0, %v4418_v9 }
0x19bb   :  { %v3348_v15 = vadd.f32 1.0, %v4420_v10 }
0x19bc   :  { %v3353_v23 = vmul.f32 %v3349_v11, %v3337_v16 }
0x19bd   :  { %v3352_v17 = vmul.f32 %v3348_v15, %v3336_v12 }
0x19bf   :  { %4028 = vmatprep.mubr.msk.f32.mxu0 %vm1893_vm5, %v3352_v17 }
0x19c0   :  { %4029 = vmatmul.mubr.msk.f32.gmra.mrb[30].mxu0 %vm1893_vm5, %v3353_v23 }
0x1a8c   :  { %v4027_v26 = vpop.f32.mrb[28].mxu0 }
0x1a8d   :  { %v3455_v28 = vadd.f32 %v4027_v26, %v3616_v24  ;;  %v3449_v29 = vpop.f32.mrb[29].mxu0 }
0x1a8e   :  { %v3450_v30 = vadd.f32 %v3616_v24, %v3449_v29 }
0x1a8f   :  { %v3469_v31 = vadd.f32 %v3455_v28, %v5403_v13 }
0x1a90   :  { %v3468_v32 = vadd.f32 %v3450_v30, %v5406_v27 }
0x1a91   :  { %3473 = vst.msk [vmem:[#allocation19 + $0x8] sm:$0xff] %vm566_vm3, %v3469_v31 }
0x1a92   :  { %3472 = vst.msk [vmem:[#allocation19] sm:$0xff] %vm566_vm3, %v3468_v32 }
0x1a93   :  { %v4030_v34 = vpop.f32.mrb[30].mxu0 }
0x1a94   :  { %v3465_v35 = vadd.f32 %v4030_v34, %v3616_v24  ;;  %v3459_v36 = vpop.f32.mrb[31].mxu0 }
0x1a95   :  { %v3460_v14 = vadd.f32 %v3616_v24, %v3459_v36 }
0x1a96   :  { %v3471_v19 = vadd.f32 %v3465_v35, %v5416_v52 }
0x1a97   :  { %v3470_v39 = vadd.f32 %v3460_v14, %v5413_v20 }
0x1a98   :  { %3475 = vst.msk [vmem:[#allocation19 + $0x18] sm:$0xff] %vm566_vm3, %v3471_v19 }
0x1a99   :  { %3474 = vst.msk [vmem:[#allocation19 + $0x10] sm:$0xff] %vm566_vm3, %v3470_v39 }
0x1a9a   :  { %4652 = shalt.err (!%p4649_p0)
}
0x1a9b   :  { %s5527_s0 = sld [smem:[#allocation29_spill]] }
0x1aa1   :  { %s4653_s12 = scalar_lea.hbm %s5527_s0, 512 }
0x1aa2   :  { %p4654_p1 = scmp.ne.s32.totalorder %s5527_s0, %s4653_s12  ;;  %p4657_p2 = scmp.lt.u32.totalorder %s4653_s12, %s5527_s0 }
0x1aa4   :  { %p4659_p3 = pnand %p4657_p2, %p4654_p1 }
0x1aa6   :  { %4662 = shalt.err (!%p4659_p3)
}
0x1aa7   :  { %3487 = dma.vmem_to_hbm [thread:$0]  %s3482_s18, 512, %s5527_s0, [#allocation4], %s4678_s1, %s4678_s1, %s4679_s20  }
0x1aa8   :  { %4675 = dma.done.wait [#allocation4], 512  }
0x1aa9   :  { %4676 = vsyncadd [#allocation4], 4294966784 }
0x1aaa   :  { %3491 = vsyncpa [#allocation3], 1 }
0x1aab   :  { %3492 = vsyncpa [#allocation6], 1 }
0x1aac   :  { %3493 = vsyncpa [#allocation9], 1 }
0x1aad   :  { %3494 = vsyncpa [#allocation12], 1 }
0x1aae   :  { %3495 = vsyncpa [#allocation15], 1 }
0x1aaf   :  { %3496 = vsyncpa [#allocation18], 1 }
0x1ab0   :  { %3497 = vsyncpa [#allocation4], 1 }

</bundles_post_ra>
